<compile_context>
chip_gen: v6e
topology: v6e:2x2x1
jax: 0.10.0
libtpu: 0.0.40
codegen_flags: <defaults>
</compile_context>

<pallas_src>
import functools

import jax
import jax.numpy as jnp
from jax import lax
from jax.experimental import pallas as pl
from jax.experimental.pallas import tpu as pltpu

LN_EPS = 1e-5        # PyTorch nn.LayerNorm default
LANE = 128           # TPU lane width
SUBLANE = 8          # TPU sublane width
MAX_BLOCK_ROWS = 2048  # per-step batch tile upper bound (amortizes ~0.35us/step overhead)


def _round_up(x, m):
    return ((x + m - 1) // m) * m


def _cdiv(a, b):
    return -(-a // b)


# ----------------------------------------------------------------------------
# Fused kernel: the whole MLP in one kernel body.
# Ref layout: (x_ref, *param_refs, o_ref); param_refs per layer are
#   [w_t, b, gamma, beta] for hidden layers and [w_t, b] for the final layer.
# ----------------------------------------------------------------------------
def _make_fused_kernel(n_layers, out_f, pack, block_batch, compute_dtype):
    rows_per_chunk = block_batch // pack  # multiple of 8 by construction

    def kernel(*refs):
        x_ref = refs[0]
        o_ref = refs[-1]
        p = refs[1:-1]

        h = x_ref[...]                       # compute_dtype (bf16 or f32)
        idx = 0
        for i in range(n_layers):
            w = p[idx][...]
            b = p[idx + 1][...]
            idx += 2
            # MXU matmul in the native (bf16/f32) dtype, f32 accumulation.
            y = jnp.dot(h, w, preferred_element_type=jnp.float32) + b
            if i < n_layers - 1:
                g = p[idx][...]
                beta = p[idx + 1][...]
                idx += 2
                # Two-pass LayerNorm statistics (numerically safe), all f32.
                mean = jnp.mean(y, axis=-1, keepdims=True)
                var = jnp.mean(jnp.square(y - mean), axis=-1, keepdims=True)
                yn = (y - mean) * lax.rsqrt(var + LN_EPS)
                yn = yn * g + beta
                # SiLU in f32; Dropout is identity in eval mode.
                act = yn * jax.nn.sigmoid(yn)
                h = act.astype(compute_dtype)
            else:
                h = y                        # final Linear output, f32

        h = h.astype(o_ref.dtype)
        if pack > 1:
            # Pack `pack` contiguous row-chunks of the (block_batch, out_f) result into
            # the 128 lanes of the (block_batch/pack, 128) output block.  Static value
            # slices + static ref-slice stores only; HBM write-back is lane-dense.
            for k in range(pack):
                o_ref[:, k * out_f:(k + 1) * out_f] = (
                    h[k * rows_per_chunk:(k + 1) * rows_per_chunk, :])
        else:
            o_ref[...] = h

    return kernel


# ----------------------------------------------------------------------------
# Wrapper: batch tiling + packed lane-dense final output, single pallas_call.
# ----------------------------------------------------------------------------
@functools.partial(jax.jit, static_argnames=("block_batch", "compute_dtype"))
def mlpln_forward(x, params, block_batch=None, compute_dtype=jnp.bfloat16):
    n_layers = len(params)
    batch, in_f = x.shape
    out_f = params[-1]["w_t"].shape[1]

    # --- output layout plan: lane-dense HBM stores without zero-pad byte inflation.
    if out_f % LANE == 0:
        pack, out_cols, col_pad = 1, out_f, 0
    elif LANE % out_f == 0:
        pack, out_cols, col_pad = LANE // out_f, LANE, 0
    else:
        # Fallback (not hit by this MLPLN config): zero-pad final columns to a lane multiple.
        padded = _round_up(out_f, LANE)
        pack, out_cols, col_pad = 1, padded, padded - out_f

    align = pack * SUBLANE  # keeps packed output block rows a multiple of 8

    # --- batch tiling: big tiles, bounded padding, even step count >= 2 when possible.
    if block_batch is None:
        n_steps = max(1, _cdiv(batch, MAX_BLOCK_ROWS))
        if batch > align:
            n_steps = max(n_steps, 2)     # v7x: give both TensorCores work
        if n_steps > 1 and (n_steps % 2):
            n_steps += 1                  # even step count balances the two cores
        block_batch = _round_up(_cdiv(batch, n_steps), align)
    else:
        block_batch = _round_up(block_batch, align)
        n_steps = _cdiv(batch, block_batch)
    batch_pad = block_batch * n_steps

    x_p = x if batch_pad == batch else jnp.pad(x, ((0, batch_pad - batch), (0, 0)))
    x_p = x_p.astype(compute_dtype)

    def _resident(arr):
        # Full-array block, same block index every grid step -> DMA'd once, VMEM-resident.
        return pl.BlockSpec(arr.shape, lambda i: (0, 0))

    flat_inputs = [x_p]
    in_specs = [pl.BlockSpec((block_batch, in_f), lambda i: (i, 0))]
    for li, layer in enumerate(params):
        w_t = layer["w_t"].astype(compute_dtype)   # matmul operands in compute_dtype
        b = layer["b"].astype(jnp.float32)         # post-matmul math stays f32
        if li == n_layers - 1 and col_pad:
            w_t = jnp.pad(w_t, ((0, 0), (0, col_pad)))
            b = jnp.pad(b, ((0, 0), (0, col_pad)))
        flat_inputs += [w_t, b]
        in_specs += [_resident(w_t), _resident(b)]
        if li < n_layers - 1:
            g = layer["gamma"].astype(jnp.float32)
            bt = layer["beta"].astype(jnp.float32)
            flat_inputs += [g, bt]
            in_specs += [_resident(g), _resident(bt)]

    out_rows = batch_pad // pack
    out = pl.pallas_call(
        _make_fused_kernel(n_layers, out_f, pack, block_batch, compute_dtype),
        out_shape=jax.ShapeDtypeStruct((out_rows, out_cols), jnp.float32),
        grid=(n_steps,),
        in_specs=in_specs,
        out_specs=pl.BlockSpec((block_batch // pack, out_cols), lambda i: (i, 0)),
        compiler_params=pltpu.CompilerParams(
            # Batch tiles are independent -> megacore-shardable on v7x.
            dimension_semantics=("parallel",),
        ),
    )(*flat_inputs)

    if pack > 1:
        rpc = block_batch // pack
        # Un-pack: (n_steps*rpc, pack*out_f) -> (batch_pad, out_f).  Tiny array; cheap.
        out = out.reshape(n_steps, rpc, pack, out_f)
        out = out.transpose(0, 2, 1, 3).reshape(batch_pad, out_f)
        return out[:batch]
    return out[:batch, :out_f]


# ----------------------------------------------------------------------------
# Parameter construction (deterministic, PyTorch-style init)
# ----------------------------------------------------------------------------
def init_mlpln_params(key, sizes):
    """Returns a list of per-layer dicts. Last layer has no LayerNorm params."""
    params = []
    n_layers = len(sizes) - 1
    for s in range(n_layers):
        d_in, d_out = sizes[s], sizes[s + 1]
        key, kw, kb = jax.random.split(key, 3)
        bound = 1.0 / (d_in ** 0.5)
        # PyTorch nn.Linear: weight (out, in) ~ U(-bound, bound); stored transposed.
        w_t = jax.random.uniform(kw, (d_in, d_out), jnp.float32, -bound, bound)
        b = jax.random.uniform(kb, (1, d_out), jnp.float32, -bound, bound)
        layer = {"w_t": w_t, "b": b}
        if s < n_layers - 1:
            layer["gamma"] = jnp.ones((1, d_out), jnp.float32)
            layer["beta"] = jnp.zeros((1, d_out), jnp.float32)
        params.append(layer)
    return params


# ----------------------------------------------------------------------------
# Pure-JAX reference (PyTorch semantics when compute_dtype=f32; with bf16 it
# mirrors the kernel's matmul casting exactly, LN/SiLU in f32).
# ----------------------------------------------------------------------------
def mlpln_reference(x, params, compute_dtype=jnp.float32):
    h = x.astype(compute_dtype)
    n = len(params)
    for i, layer in enumerate(params):
        y = jnp.dot(h, layer["w_t"].astype(compute_dtype),
                    preferred_element_type=jnp.float32) + layer["b"]
        if i < n - 1:
            mean = jnp.mean(y, axis=-1, keepdims=True)
            var = jnp.mean(jnp.square(y - mean), axis=-1, keepdims=True)
            yn = (y - mean) * lax.rsqrt(var + LN_EPS)
            yn = yn * layer["gamma"] + layer["beta"]
            h = (yn * jax.nn.sigmoid(yn)).astype(compute_dtype)
        else:
            h = y
    return h


if __name__ == "__main__":
    sizes = [16, 32, 32, 8]   # MLPLN(sizes=[16, 32, 32, 8])
    key = jax.random.PRNGKey(0)
    key_p, key_x1, key_x2 = jax.random.split(key, 3)
    params = init_mlpln_params(key_p, sizes)

    # 1) Small case, exact-f32 path (module semantics), single grid step + packing.
    batch = 8
    x = jax.random.normal(key_x1, (batch, sizes[0]), jnp.float32)
    out = jax.block_until_ready(mlpln_forward(x, params, compute_dtype=jnp.float32))
    ref = mlpln_reference(x, params)
    assert out.shape == (batch, sizes[-1])
    assert jnp.allclose(out, ref, atol=1e-4, rtol=1e-3), "mismatch vs reference (small, f32)"

    # 2) Larger batch: multi-tile grid (2 parallel steps) + default bf16 matmul path.
    batch2 = 1040
    x2 = jax.random.normal(key_x2, (batch2, sizes[0]), jnp.float32)
    out2 = jax.block_until_ready(mlpln_forward(x2, params))          # bf16 default
    ref2_bf16 = mlpln_reference(x2, params, compute_dtype=jnp.bfloat16)
    ref2_f32 = mlpln_reference(x2, params)
    assert out2.shape == (batch2, sizes[-1])
    assert jnp.allclose(out2, ref2_bf16, atol=5e-4, rtol=5e-3), "mismatch vs bf16-matched reference"
    assert jnp.allclose(out2, ref2_f32, atol=1e-1, rtol=1e-1), "bf16 path drifted too far from f32 reference"

    # 3) Same multi-tile case on the exact-f32 path.
    out3 = jax.block_until_ready(mlpln_forward(x2, params, compute_dtype=jnp.float32))
    assert jnp.allclose(out3, ref2_f32, atol=1e-4, rtol=1e-3), "mismatch vs reference (tiled, f32)"

    print("KERNEL_OK")
</pallas_src>

<mosaic_0001>
module attributes {stable_mosaic.version = 11 : i64} {
  func.func @kernel(%arg0: i32, %arg1: memref<128x16xf32, #tpu.memory_space<vmem>>, %arg2: memref<16x32xf32, #tpu.memory_space<vmem>>, %arg3: memref<1x32xf32, #tpu.memory_space<vmem>>, %arg4: memref<1x32xf32, #tpu.memory_space<vmem>>, %arg5: memref<1x32xf32, #tpu.memory_space<vmem>>, %arg6: memref<32x32xf32, #tpu.memory_space<vmem>>, %arg7: memref<1x32xf32, #tpu.memory_space<vmem>>, %arg8: memref<1x32xf32, #tpu.memory_space<vmem>>, %arg9: memref<1x32xf32, #tpu.memory_space<vmem>>, %arg10: memref<32x8xf32, #tpu.memory_space<vmem>>, %arg11: memref<1x8xf32, #tpu.memory_space<vmem>>, %arg12: memref<8x128xf32, #tpu.memory_space<vmem>>) attributes {dimension_semantics = [#tpu.dimension_semantics<parallel>], iteration_bounds = array<i64: 1>, scalar_prefetch = 0 : i64, scratch_operands = 0 : i64, tpu.core_type = #tpu.core_type<tc>, window_params = [{transform_indices = @transform_0, window_bounds = array<i64: 128, 16>}, {pipeline_mode = #tpu.pipeline_mode<synchronous>, transform_indices = @transform_1, window_bounds = array<i64: 16, 32>}, {pipeline_mode = #tpu.pipeline_mode<synchronous>, transform_indices = @transform_2, window_bounds = array<i64: 1, 32>}, {pipeline_mode = #tpu.pipeline_mode<synchronous>, transform_indices = @transform_3, window_bounds = array<i64: 1, 32>}, {pipeline_mode = #tpu.pipeline_mode<synchronous>, transform_indices = @transform_4, window_bounds = array<i64: 1, 32>}, {pipeline_mode = #tpu.pipeline_mode<synchronous>, transform_indices = @transform_5, window_bounds = array<i64: 32, 32>}, {pipeline_mode = #tpu.pipeline_mode<synchronous>, transform_indices = @transform_6, window_bounds = array<i64: 1, 32>}, {pipeline_mode = #tpu.pipeline_mode<synchronous>, transform_indices = @transform_7, window_bounds = array<i64: 1, 32>}, {pipeline_mode = #tpu.pipeline_mode<synchronous>, transform_indices = @transform_8, window_bounds = array<i64: 1, 32>}, {pipeline_mode = #tpu.pipeline_mode<synchronous>, transform_indices = @transform_9, window_bounds = array<i64: 32, 8>}, {pipeline_mode = #tpu.pipeline_mode<synchronous>, transform_indices = @transform_10, window_bounds = array<i64: 1, 8>}, {transform_indices = @transform_11, window_bounds = array<i64: 8, 128>}]} {
    %c0 = arith.constant 0 : index
    %c0_0 = arith.constant 0 : index
    %0 = vector.load %arg1[%c0, %c0_0] : memref<128x16xf32, #tpu.memory_space<vmem>>, vector<128x16xf32>
    %c0_1 = arith.constant 0 : index
    %c0_2 = arith.constant 0 : index
    %1 = vector.load %arg2[%c0_1, %c0_2] : memref<16x32xf32, #tpu.memory_space<vmem>>, vector<16x32xf32>
    %c0_3 = arith.constant 0 : index
    %c0_4 = arith.constant 0 : index
    %2 = vector.load %arg3[%c0_3, %c0_4] : memref<1x32xf32, #tpu.memory_space<vmem>>, vector<1x32xf32>
    %cst = arith.constant dense<0.000000e+00> : vector<128x32xf32>
    %3 = tpu.matmul %0, %1, %cst {dimension_numbers = #tpu.dot_dimension_numbers<[1], [0], [0], [1], [0, 0, 1, 1], [], []>} : vector<128x16xf32>, vector<16x32xf32>, vector<128x32xf32> -> vector<128x32xf32>
    %4 = vector.broadcast %2 : vector<1x32xf32> to vector<128x32xf32>
    %5 = arith.addf %3, %4 : vector<128x32xf32>
    %c0_5 = arith.constant 0 : index
    %c0_6 = arith.constant 0 : index
    %6 = vector.load %arg4[%c0_5, %c0_6] : memref<1x32xf32, #tpu.memory_space<vmem>>, vector<1x32xf32>
    %c0_7 = arith.constant 0 : index
    %c0_8 = arith.constant 0 : index
    %7 = vector.load %arg5[%c0_7, %c0_8] : memref<1x32xf32, #tpu.memory_space<vmem>>, vector<1x32xf32>
    %cst_9 = arith.constant dense<0.000000e+00> : vector<128xf32>
    %8 = vector.multi_reduction <add>, %5, %cst_9 [1] : vector<128x32xf32> to vector<128xf32>
    %9 = vector.shape_cast %8 : vector<128xf32> to vector<128x1xf32>
    %cst_10 = arith.constant 3.200000e+01 : f32
    %10 = vector.broadcast %cst_10 : f32 to vector<128x1xf32>
    %11 = arith.divf %9, %10 : vector<128x1xf32>
    %12 = vector.broadcast %11 : vector<128x1xf32> to vector<128x32xf32>
    %13 = arith.subf %5, %12 : vector<128x32xf32>
    %14 = arith.mulf %13, %13 : vector<128x32xf32>
    %cst_11 = arith.constant dense<0.000000e+00> : vector<128xf32>
    %15 = vector.multi_reduction <add>, %14, %cst_11 [1] : vector<128x32xf32> to vector<128xf32>
    %16 = vector.shape_cast %15 : vector<128xf32> to vector<128x1xf32>
    %cst_12 = arith.constant 3.200000e+01 : f32
    %17 = vector.broadcast %cst_12 : f32 to vector<128x1xf32>
    %18 = arith.divf %16, %17 : vector<128x1xf32>
    %19 = vector.broadcast %11 : vector<128x1xf32> to vector<128x32xf32>
    %20 = arith.subf %5, %19 : vector<128x32xf32>
    %cst_13 = arith.constant 9.99999974E-6 : f32
    %21 = vector.broadcast %cst_13 : f32 to vector<128x1xf32>
    %22 = arith.addf %18, %21 : vector<128x1xf32>
    %23 = math.rsqrt %22 : vector<128x1xf32>
    %24 = vector.broadcast %23 : vector<128x1xf32> to vector<128x32xf32>
    %25 = arith.mulf %20, %24 : vector<128x32xf32>
    %26 = vector.broadcast %6 : vector<1x32xf32> to vector<128x32xf32>
    %27 = arith.mulf %25, %26 : vector<128x32xf32>
    %28 = vector.broadcast %7 : vector<1x32xf32> to vector<128x32xf32>
    %29 = arith.addf %27, %28 : vector<128x32xf32>
    %30 = arith.negf %29 : vector<128x32xf32>
    %31 = math.exp %30 : vector<128x32xf32>
    %cst_14 = arith.constant 1.000000e+00 : f32
    %32 = vector.broadcast %cst_14 : f32 to vector<128x32xf32>
    %33 = arith.addf %32, %31 : vector<128x32xf32>
    %34 = arith.divf %32, %33 : vector<128x32xf32>
    %35 = arith.mulf %29, %34 : vector<128x32xf32>
    %c0_15 = arith.constant 0 : index
    %c0_16 = arith.constant 0 : index
    %36 = vector.load %arg6[%c0_15, %c0_16] : memref<32x32xf32, #tpu.memory_space<vmem>>, vector<32x32xf32>
    %c0_17 = arith.constant 0 : index
    %c0_18 = arith.constant 0 : index
    %37 = vector.load %arg7[%c0_17, %c0_18] : memref<1x32xf32, #tpu.memory_space<vmem>>, vector<1x32xf32>
    %cst_19 = arith.constant dense<0.000000e+00> : vector<128x32xf32>
    %38 = tpu.matmul %35, %36, %cst_19 {dimension_numbers = #tpu.dot_dimension_numbers<[1], [0], [0], [1], [0, 0, 1, 1], [], []>} : vector<128x32xf32>, vector<32x32xf32>, vector<128x32xf32> -> vector<128x32xf32>
    %39 = vector.broadcast %37 : vector<1x32xf32> to vector<128x32xf32>
    %40 = arith.addf %38, %39 : vector<128x32xf32>
    %c0_20 = arith.constant 0 : index
    %c0_21 = arith.constant 0 : index
    %41 = vector.load %arg8[%c0_20, %c0_21] : memref<1x32xf32, #tpu.memory_space<vmem>>, vector<1x32xf32>
    %c0_22 = arith.constant 0 : index
    %c0_23 = arith.constant 0 : index
    %42 = vector.load %arg9[%c0_22, %c0_23] : memref<1x32xf32, #tpu.memory_space<vmem>>, vector<1x32xf32>
    %cst_24 = arith.constant dense<0.000000e+00> : vector<128xf32>
    %43 = vector.multi_reduction <add>, %40, %cst_24 [1] : vector<128x32xf32> to vector<128xf32>
    %44 = vector.shape_cast %43 : vector<128xf32> to vector<128x1xf32>
    %cst_25 = arith.constant 3.200000e+01 : f32
    %45 = vector.broadcast %cst_25 : f32 to vector<128x1xf32>
    %46 = arith.divf %44, %45 : vector<128x1xf32>
    %47 = vector.broadcast %46 : vector<128x1xf32> to vector<128x32xf32>
    %48 = arith.subf %40, %47 : vector<128x32xf32>
    %49 = arith.mulf %48, %48 : vector<128x32xf32>
    %cst_26 = arith.constant dense<0.000000e+00> : vector<128xf32>
    %50 = vector.multi_reduction <add>, %49, %cst_26 [1] : vector<128x32xf32> to vector<128xf32>
    %51 = vector.shape_cast %50 : vector<128xf32> to vector<128x1xf32>
    %cst_27 = arith.constant 3.200000e+01 : f32
    %52 = vector.broadcast %cst_27 : f32 to vector<128x1xf32>
    %53 = arith.divf %51, %52 : vector<128x1xf32>
    %54 = vector.broadcast %46 : vector<128x1xf32> to vector<128x32xf32>
    %55 = arith.subf %40, %54 : vector<128x32xf32>
    %cst_28 = arith.constant 9.99999974E-6 : f32
    %56 = vector.broadcast %cst_28 : f32 to vector<128x1xf32>
    %57 = arith.addf %53, %56 : vector<128x1xf32>
    %58 = math.rsqrt %57 : vector<128x1xf32>
    %59 = vector.broadcast %58 : vector<128x1xf32> to vector<128x32xf32>
    %60 = arith.mulf %55, %59 : vector<128x32xf32>
    %61 = vector.broadcast %41 : vector<1x32xf32> to vector<128x32xf32>
    %62 = arith.mulf %60, %61 : vector<128x32xf32>
    %63 = vector.broadcast %42 : vector<1x32xf32> to vector<128x32xf32>
    %64 = arith.addf %62, %63 : vector<128x32xf32>
    %65 = arith.negf %64 : vector<128x32xf32>
    %66 = math.exp %65 : vector<128x32xf32>
    %cst_29 = arith.constant 1.000000e+00 : f32
    %67 = vector.broadcast %cst_29 : f32 to vector<128x32xf32>
    %68 = arith.addf %67, %66 : vector<128x32xf32>
    %69 = arith.divf %67, %68 : vector<128x32xf32>
    %70 = arith.mulf %64, %69 : vector<128x32xf32>
    %c0_30 = arith.constant 0 : index
    %c0_31 = arith.constant 0 : index
    %71 = vector.load %arg10[%c0_30, %c0_31] : memref<32x8xf32, #tpu.memory_space<vmem>>, vector<32x8xf32>
    %c0_32 = arith.constant 0 : index
    %c0_33 = arith.constant 0 : index
    %72 = vector.load %arg11[%c0_32, %c0_33] : memref<1x8xf32, #tpu.memory_space<vmem>>, vector<1x8xf32>
    %cst_34 = arith.constant dense<0.000000e+00> : vector<128x8xf32>
    %73 = tpu.matmul %70, %71, %cst_34 {dimension_numbers = #tpu.dot_dimension_numbers<[1], [0], [0], [1], [0, 0, 1, 1], [], []>} : vector<128x32xf32>, vector<32x8xf32>, vector<128x8xf32> -> vector<128x8xf32>
    %74 = vector.broadcast %72 : vector<1x8xf32> to vector<128x8xf32>
    %75 = arith.addf %73, %74 : vector<128x8xf32>
    %76 = vector.extract_strided_slice %75 {offsets = [0, 0], sizes = [8, 8], strides = [1, 1]} : vector<128x8xf32> to vector<8x8xf32>
    %c0_35 = arith.constant 0 : index
    %c0_36 = arith.constant 0 : index
    %77 = vector.load %arg12[%c0_35, %c0_36] : memref<8x128xf32, #tpu.memory_space<vmem>>, vector<8x8xf32>
    tpu.vector_store %arg12[%c0_35, %c0_36], %76 {strides = array<i32>} : memref<8x128xf32, #tpu.memory_space<vmem>>, vector<8x8xf32>,
    %78 = vector.extract_strided_slice %75 {offsets = [8, 0], sizes = [8, 8], strides = [1, 1]} : vector<128x8xf32> to vector<8x8xf32>
    %c0_37 = arith.constant 0 : index
    %c8 = arith.constant 8 : index
    %79 = vector.load %arg12[%c0_37, %c8] : memref<8x128xf32, #tpu.memory_space<vmem>>, vector<8x8xf32>
    tpu.vector_store %arg12[%c0_37, %c8], %78 {strides = array<i32>} : memref<8x128xf32, #tpu.memory_space<vmem>>, vector<8x8xf32>,
    %80 = vector.extract_strided_slice %75 {offsets = [16, 0], sizes = [8, 8], strides = [1, 1]} : vector<128x8xf32> to vector<8x8xf32>
    %c0_38 = arith.constant 0 : index
    %c16 = arith.constant 16 : index
    %81 = vector.load %arg12[%c0_38, %c16] : memref<8x128xf32, #tpu.memory_space<vmem>>, vector<8x8xf32>
    tpu.vector_store %arg12[%c0_38, %c16], %80 {strides = array<i32>} : memref<8x128xf32, #tpu.memory_space<vmem>>, vector<8x8xf32>,
    %82 = vector.extract_strided_slice %75 {offsets = [24, 0], sizes = [8, 8], strides = [1, 1]} : vector<128x8xf32> to vector<8x8xf32>
    %c0_39 = arith.constant 0 : index
    %c24 = arith.constant 24 : index
    %83 = vector.load %arg12[%c0_39, %c24] : memref<8x128xf32, #tpu.memory_space<vmem>>, vector<8x8xf32>
    tpu.vector_store %arg12[%c0_39, %c24], %82 {strides = array<i32>} : memref<8x128xf32, #tpu.memory_space<vmem>>, vector<8x8xf32>,
    %84 = vector.extract_strided_slice %75 {offsets = [32, 0], sizes = [8, 8], strides = [1, 1]} : vector<128x8xf32> to vector<8x8xf32>
    %c0_40 = arith.constant 0 : index
    %c32 = arith.constant 32 : index
    %85 = vector.load %arg12[%c0_40, %c32] : memref<8x128xf32, #tpu.memory_space<vmem>>, vector<8x8xf32>
    tpu.vector_store %arg12[%c0_40, %c32], %84 {strides = array<i32>} : memref<8x128xf32, #tpu.memory_space<vmem>>, vector<8x8xf32>,
    %86 = vector.extract_strided_slice %75 {offsets = [40, 0], sizes = [8, 8], strides = [1, 1]} : vector<128x8xf32> to vector<8x8xf32>
    %c0_41 = arith.constant 0 : index
    %c40 = arith.constant 40 : index
    %87 = vector.load %arg12[%c0_41, %c40] : memref<8x128xf32, #tpu.memory_space<vmem>>, vector<8x8xf32>
    tpu.vector_store %arg12[%c0_41, %c40], %86 {strides = array<i32>} : memref<8x128xf32, #tpu.memory_space<vmem>>, vector<8x8xf32>,
    %88 = vector.extract_strided_slice %75 {offsets = [48, 0], sizes = [8, 8], strides = [1, 1]} : vector<128x8xf32> to vector<8x8xf32>
    %c0_42 = arith.constant 0 : index
    %c48 = arith.constant 48 : index
    %89 = vector.load %arg12[%c0_42, %c48] : memref<8x128xf32, #tpu.memory_space<vmem>>, vector<8x8xf32>
    tpu.vector_store %arg12[%c0_42, %c48], %88 {strides = array<i32>} : memref<8x128xf32, #tpu.memory_space<vmem>>, vector<8x8xf32>,
    %90 = vector.extract_strided_slice %75 {offsets = [56, 0], sizes = [8, 8], strides = [1, 1]} : vector<128x8xf32> to vector<8x8xf32>
    %c0_43 = arith.constant 0 : index
    %c56 = arith.constant 56 : index
    %91 = vector.load %arg12[%c0_43, %c56] : memref<8x128xf32, #tpu.memory_space<vmem>>, vector<8x8xf32>
    tpu.vector_store %arg12[%c0_43, %c56], %90 {strides = array<i32>} : memref<8x128xf32, #tpu.memory_space<vmem>>, vector<8x8xf32>,
    %92 = vector.extract_strided_slice %75 {offsets = [64, 0], sizes = [8, 8], strides = [1, 1]} : vector<128x8xf32> to vector<8x8xf32>
    %c0_44 = arith.constant 0 : index
    %c64 = arith.constant 64 : index
    %93 = vector.load %arg12[%c0_44, %c64] : memref<8x128xf32, #tpu.memory_space<vmem>>, vector<8x8xf32>
    tpu.vector_store %arg12[%c0_44, %c64], %92 {strides = array<i32>} : memref<8x128xf32, #tpu.memory_space<vmem>>, vector<8x8xf32>,
    %94 = vector.extract_strided_slice %75 {offsets = [72, 0], sizes = [8, 8], strides = [1, 1]} : vector<128x8xf32> to vector<8x8xf32>
    %c0_45 = arith.constant 0 : index
    %c72 = arith.constant 72 : index
    %95 = vector.load %arg12[%c0_45, %c72] : memref<8x128xf32, #tpu.memory_space<vmem>>, vector<8x8xf32>
    tpu.vector_store %arg12[%c0_45, %c72], %94 {strides = array<i32>} : memref<8x128xf32, #tpu.memory_space<vmem>>, vector<8x8xf32>,
    %96 = vector.extract_strided_slice %75 {offsets = [80, 0], sizes = [8, 8], strides = [1, 1]} : vector<128x8xf32> to vector<8x8xf32>
    %c0_46 = arith.constant 0 : index
    %c80 = arith.constant 80 : index
    %97 = vector.load %arg12[%c0_46, %c80] : memref<8x128xf32, #tpu.memory_space<vmem>>, vector<8x8xf32>
    tpu.vector_store %arg12[%c0_46, %c80], %96 {strides = array<i32>} : memref<8x128xf32, #tpu.memory_space<vmem>>, vector<8x8xf32>,
    %98 = vector.extract_strided_slice %75 {offsets = [88, 0], sizes = [8, 8], strides = [1, 1]} : vector<128x8xf32> to vector<8x8xf32>
    %c0_47 = arith.constant 0 : index
    %c88 = arith.constant 88 : index
    %99 = vector.load %arg12[%c0_47, %c88] : memref<8x128xf32, #tpu.memory_space<vmem>>, vector<8x8xf32>
    tpu.vector_store %arg12[%c0_47, %c88], %98 {strides = array<i32>} : memref<8x128xf32, #tpu.memory_space<vmem>>, vector<8x8xf32>,
    %100 = vector.extract_strided_slice %75 {offsets = [96, 0], sizes = [8, 8], strides = [1, 1]} : vector<128x8xf32> to vector<8x8xf32>
    %c0_48 = arith.constant 0 : index
    %c96 = arith.constant 96 : index
    %101 = vector.load %arg12[%c0_48, %c96] : memref<8x128xf32, #tpu.memory_space<vmem>>, vector<8x8xf32>
    tpu.vector_store %arg12[%c0_48, %c96], %100 {strides = array<i32>} : memref<8x128xf32, #tpu.memory_space<vmem>>, vector<8x8xf32>,
    %102 = vector.extract_strided_slice %75 {offsets = [104, 0], sizes = [8, 8], strides = [1, 1]} : vector<128x8xf32> to vector<8x8xf32>
    %c0_49 = arith.constant 0 : index
    %c104 = arith.constant 104 : index
    %103 = vector.load %arg12[%c0_49, %c104] : memref<8x128xf32, #tpu.memory_space<vmem>>, vector<8x8xf32>
    tpu.vector_store %arg12[%c0_49, %c104], %102 {strides = array<i32>} : memref<8x128xf32, #tpu.memory_space<vmem>>, vector<8x8xf32>,
    %104 = vector.extract_strided_slice %75 {offsets = [112, 0], sizes = [8, 8], strides = [1, 1]} : vector<128x8xf32> to vector<8x8xf32>
    %c0_50 = arith.constant 0 : index
    %c112 = arith.constant 112 : index
    %105 = vector.load %arg12[%c0_50, %c112] : memref<8x128xf32, #tpu.memory_space<vmem>>, vector<8x8xf32>
    tpu.vector_store %arg12[%c0_50, %c112], %104 {strides = array<i32>} : memref<8x128xf32, #tpu.memory_space<vmem>>, vector<8x8xf32>,
    %106 = vector.extract_strided_slice %75 {offsets = [120, 0], sizes = [8, 8], strides = [1, 1]} : vector<128x8xf32> to vector<8x8xf32>
    %c0_51 = arith.constant 0 : index
    %c120 = arith.constant 120 : index
    %107 = vector.load %arg12[%c0_51, %c120] : memref<8x128xf32, #tpu.memory_space<vmem>>, vector<8x8xf32>
    tpu.vector_store %arg12[%c0_51, %c120], %106 {strides = array<i32>} : memref<8x128xf32, #tpu.memory_space<vmem>>, vector<8x8xf32>,
    return
  }
  func.func @transform_0(%arg0: i32) -> (i32, i32) {
    %c0_i32 = arith.constant 0 : i32
    %c0_i32_0 = arith.constant 0 : i32
    return %arg0, %c0_i32 : i32, i32
  }
  func.func @transform_1(%arg0: i32) -> (i32, i32) {
    %c0_i32 = arith.constant 0 : i32
    %c0_i32_0 = arith.constant 0 : i32
    %c0_i32_1 = arith.constant 0 : i32
    return %c0_i32, %c0_i32_0 : i32, i32
  }
  func.func @transform_2(%arg0: i32) -> (i32, i32) {
    %c0_i32 = arith.constant 0 : i32
    %c0_i32_0 = arith.constant 0 : i32
    %c0_i32_1 = arith.constant 0 : i32
    return %c0_i32, %c0_i32_0 : i32, i32
  }
  func.func @transform_3(%arg0: i32) -> (i32, i32) {
    %c0_i32 = arith.constant 0 : i32
    %c0_i32_0 = arith.constant 0 : i32
    %c0_i32_1 = arith.constant 0 : i32
    return %c0_i32, %c0_i32_0 : i32, i32
  }
  func.func @transform_4(%arg0: i32) -> (i32, i32) {
    %c0_i32 = arith.constant 0 : i32
    %c0_i32_0 = arith.constant 0 : i32
    %c0_i32_1 = arith.constant 0 : i32
    return %c0_i32, %c0_i32_0 : i32, i32
  }
  func.func @transform_5(%arg0: i32) -> (i32, i32) {
    %c0_i32 = arith.constant 0 : i32
    %c0_i32_0 = arith.constant 0 : i32
    %c0_i32_1 = arith.constant 0 : i32
    return %c0_i32, %c0_i32_0 : i32, i32
  }
  func.func @transform_6(%arg0: i32) -> (i32, i32) {
    %c0_i32 = arith.constant 0 : i32
    %c0_i32_0 = arith.constant 0 : i32
    %c0_i32_1 = arith.constant 0 : i32
    return %c0_i32, %c0_i32_0 : i32, i32
  }
  func.func @transform_7(%arg0: i32) -> (i32, i32) {
    %c0_i32 = arith.constant 0 : i32
    %c0_i32_0 = arith.constant 0 : i32
    %c0_i32_1 = arith.constant 0 : i32
    return %c0_i32, %c0_i32_0 : i32, i32
  }
  func.func @transform_8(%arg0: i32) -> (i32, i32) {
    %c0_i32 = arith.constant 0 : i32
    %c0_i32_0 = arith.constant 0 : i32
    %c0_i32_1 = arith.constant 0 : i32
    return %c0_i32, %c0_i32_0 : i32, i32
  }
  func.func @transform_9(%arg0: i32) -> (i32, i32) {
    %c0_i32 = arith.constant 0 : i32
    %c0_i32_0 = arith.constant 0 : i32
    %c0_i32_1 = arith.constant 0 : i32
    return %c0_i32, %c0_i32_0 : i32, i32
  }
  func.func @transform_10(%arg0: i32) -> (i32, i32) {
    %c0_i32 = arith.constant 0 : i32
    %c0_i32_0 = arith.constant 0 : i32
    %c0_i32_1 = arith.constant 0 : i32
    return %c0_i32, %c0_i32_0 : i32, i32
  }
  func.func @transform_11(%arg0: i32) -> (i32, i32) {
    %c0_i32 = arith.constant 0 : i32
    %c0_i32_0 = arith.constant 0 : i32
    return %arg0, %c0_i32 : i32, i32
  }
}

</mosaic_0001>

<bundles_post_ra>
// kernel: mlpln_forward.1
= control target key start
LH: loop header
LB: loop body
LE: loop exit
PB: predicated region body
PF: predicated region fallthrough
CT: control target
= control target key end

     0   :  { %vm63_vm0 = vcmask 130048   ;;  %vm259_vm1 = vcmask 261120   ;;  %vm1399_vm2 = vcmask 64512   ;;  %s1943_s14 = smov 8   ;;  %s1944_s15 = smov 24   ;;  %vm1405_vm3 = vcmask 130112   ;;  %s2757_s1 = inlined_call_operand.vmem [shape: f32[16,32], index: 1, kind: input, shape index: {}]   ;;  %s2758_s0 = inlined_call_operand.vmem [shape: f32[128,16], index: 0, kind: input, shape index: {}]   ;;  %s2759_s2 = inlined_call_operand.vmem [shape: f32[1,32], index: 2, kind: input, shape index: {}]   ;;  %s2760_s5 = inlined_call_operand.vmem [shape: f32[32,32], index: 5, kind: input, shape index: {}]   ;;  %s2761_s3 = inlined_call_operand.vmem [shape: f32[1,32], index: 3, kind: input, shape index: {}]   ;;  %s2762_s4 = inlined_call_operand.vmem [shape: f32[1,32], index: 4, kind: input, shape index: {}]   ;;  %s2763_s6 = inlined_call_operand.vmem [shape: f32[1,32], index: 6, kind: input, shape index: {}]   ;;  %s2764_s9 = inlined_call_operand.vmem [shape: f32[32,8], index: 9, kind: input, shape index: {}]   ;;  %s2765_s7 = inlined_call_operand.vmem [shape: f32[1,32], index: 7, kind: input, shape index: {}]   ;;  %s2766_s8 = inlined_call_operand.vmem [shape: f32[1,32], index: 8, kind: input, shape index: {}]   ;;  %s2767_s10 = inlined_call_operand.vmem [shape: f32[1,8], index: 10, kind: input, shape index: {}]   ;;  %s2768_s11 = inlined_call_operand.vmem [shape: f32[8,128], index: 11, kind: output, shape index: {}]  }
   0x1   :  { %v55_v0 = vld [vmem:[%s2757_s1 + $0x8] sm:$0xff]  ;;  %v54_v1 = vld [vmem:[%s2757_s1] sm:$0xff]  ;;  %v40_v4 = vld [vmem:[%s2758_s0 + $0x10] sm:$0xff]  ;;  %s1946_s16 = smov 40   ;;  %s1947_s17 = smov 32   ;;  %vm1411_vm4 = vcmask 195712  }
   0x2   :  { %v38_v2 = vld [vmem:[%s2758_s0] sm:$0xff]  ;;  %1640 = vmatprep.subr.mxu0 %v55_v0  ;;  %v39_v3 = vld [vmem:[%s2758_s0 + $0x8] sm:$0xff]  ;;  %1732 = vmatprep.subr.mxu1 %v55_v0  ;;  %v48_v7 = vld [vmem:[%s2758_s0 + $0x50] sm:$0xff]  ;;  %s1948_s18 = smov 56   ;;  %s1949_s19 = smov 48   ;;  %vm1417_vm5 = vcmask 261312  }
   0x3   :  { %1644 = vmatprep.mubr.msk.f32.mxu0 %vm63_vm0, %v38_v2  ;;  %1641 = vmatpush3.msra.mxu0 %v55_v0  ;;  %v46_v5 = vld [vmem:[%s2758_s0 + $0x40] sm:$0xff]  ;;  %v47_v6 = vld [vmem:[%s2758_s0 + $0x48] sm:$0xff]  ;;  %v41_v8 = vld [vmem:[%s2758_s0 + $0x18] sm:$0xff]  ;;  %s1950_s20 = smov 72   ;;  %s1952_s21 = smov 88   ;;  %vm1423_vm6 = vcmask 326912  }
   0x4   :  { %1642 = vmatprep.subr.mxu0 %v54_v1  ;;  %1734 = vmatpush3.msra.mxu1 %v55_v0  ;;  %v42_v9 = vld [vmem:[%s2758_s0 + $0x20] sm:$0xff]  ;;  %v49_v10 = vld [vmem:[%s2758_s0 + $0x58] sm:$0xff]  ;;  %v43_v12 = vld [vmem:[%s2758_s0 + $0x28] sm:$0xff]  ;;  %s1953_s22 = smov 80   ;;  %s1954_s23 = smov 104   ;;  %vm1429_vm7 = vcmask 392512  }
   0x5   :  { %1643 = vmatpush3.msra.mxu0 %v54_v1  ;;  %1733 = vmatprep.subr.mxu1 %v54_v1  ;;  %v50_v11 = vld [vmem:[%s2758_s0 + $0x60] sm:$0xff]  ;;  %v44_v13 = vld [vmem:[%s2758_s0 + $0x30] sm:$0xff]  ;;  %v51_v14 = vld [vmem:[%s2758_s0 + $0x68] sm:$0xff]  ;;  %vm1435_vm8 = vcmask 458112   ;;  %vm1441_vm9 = vcmask 523712   ;;  %vm1447_vm10 = vcmask 589312  }
   0x6   :  { %1645 = vmatmul.mubr.msk.f32.vlgmr.msra.gmra.mxu0 %vm63_vm0, %v39_v3  ;;  %1735 = vmatpush3.msra.mxu1 %v54_v1  ;;  %v52_v15 = vld [vmem:[%s2758_s0 + $0x70] sm:$0xff]  ;;  %v45_v16 = vld [vmem:[%s2758_s0 + $0x38] sm:$0xff]  ;;  %v1495_v19 = vld [vmem:[%s2759_s2] ss:$0 sm:$0xff]  ;;  %vm1453_vm11 = vcmask 654912   ;;  %vm1459_vm12 = vcmask 720512  }
   0x7   :  { %1647 = vmatprep.mubr.msk.f32.mxu0 %vm63_vm0, %v40_v4  ;;  %1656 = vmatprep.mubr.msk.f32.mxu1 %vm63_vm0, %v46_v5  ;;  %v53_v17 = vld [vmem:[%s2758_s0 + $0x78] sm:$0xff]  ;;  %vm1465_vm13 = vcmask 786112   ;;  %vm1471_vm14 = vcmask 851712   ;;  %vm1477_vm15 = vcmask 917312  }
   0x8   :  { %1657 = vmatmul.mubr.msk.f32.vlgmr.msra.gmra.mxu1 %vm63_vm0, %v47_v6 }
   0x9   :  { %1659 = vmatprep.mubr.msk.f32.mxu1 %vm63_vm0, %v48_v7 }
   0xa   :  { %1648 = vmatmul.mubr.msk.f32.gmra.mxu0 %vm63_vm0, %v41_v8 }
   0xb   :  { %1650 = vmatprep.mubr.msk.f32.mxu0 %vm63_vm0, %v42_v9 }
   0xc   :  { %1660 = vmatmul.mubr.msk.f32.gmra.mxu1 %vm63_vm0, %v49_v10 }
   0xd   :  { %1662 = vmatprep.mubr.msk.f32.mxu1 %vm63_vm0, %v50_v11 }
   0xe   :  { %1651 = vmatmul.mubr.msk.f32.gmra.mxu0 %vm63_vm0, %v43_v12 }
   0xf   :  { %1653 = vmatprep.mubr.msk.f32.mxu0 %vm63_vm0, %v44_v13 }
  0x10   :  { %1663 = vmatmul.mubr.msk.f32.gmra.mxu1 %vm63_vm0, %v51_v14 }
  0x11   :  { %1665 = vmatprep.mubr.msk.f32.mxu1 %vm63_vm0, %v52_v15 }
  0x12   :  { %1654 = vmatmul.mubr.msk.f32.gmra.mxu0 %vm63_vm0, %v45_v16 }
  0x14   :  { %1666 = vmatmul.mubr.msk.f32.gmra.mxu1 %vm63_vm0, %v53_v17  ;;  %vm1483_vm0 = vcmask 982912  }
  0xc6   :  { %v1646_v18 = vpop.f32.mrf.mxu0 }
  0xc7   :  { %v2093_v25 = vadd.f32 %v1646_v18, %v1495_v19 }
  0xc8   :  { %v178_v20 = vpop.f32.mrf.mxu0  ;;  %v1658_v21 = vpop.f32.mrf.mxu1 }
  0xc9   :  { %v2091_v22 = vadd.f32 %v1495_v19, %v178_v20  ;;  %v263_v34 = vsel %vm259_vm1, %v2093_v25, 0.0  ;;  %v2117_v49 = vadd.f32 %v1658_v21, %v1495_v19 }
  0xca   :  { %v1649_v23 = vpop.f32.mrf.mxu0  ;;  %v218_v24 = vpop.f32.mrf.mxu1 }
  0xcb   :  { %v260_v26 = vsel %vm259_vm1, %v2091_v22, 0.0  ;;  %v2097_v32 = vadd.f32 %v1649_v23, %v1495_v19  ;;  %v2111_v45 = vadd.f32 %v1495_v19, %v218_v24  ;;  %v287_v56 = vsel %vm259_vm1, %v2117_v49, 0.0 }
  0xcc   :  { %v188_v27 = vpop.f32.mrf.mxu0  ;;  %261 = vadd.xlane.f32.xlu0 %v260_v26  ;;  %v1661_v28 = vpop.f32.mrf.mxu1 }
  0xcd   :  { %v189_v29 = vadd.f32 %v1495_v19, %v188_v27  ;;  %v269_v40 = vsel %vm259_vm1, %v2097_v32, 0.0  ;;  %v284_v52 = vsel %vm259_vm1, %v2111_v45, 0.0  ;;  %v2125_v54 = vadd.f32 %v1661_v28, %v1495_v19 }
  0xce   :  { %v1652_v30 = vpop.f32.mrf.mxu0  ;;  %v228_v31 = vpop.f32.mrf.mxu1 }
  0xcf   :  { %v266_v33 = vsel %vm259_vm1, %v189_v29, 0.0  ;;  %v2102_v36 = vadd.f32 %v1652_v30, %v1495_v19  ;;  %v2119_v50 = vadd.f32 %v1495_v19, %v228_v31  ;;  %v293_v61 = vsel %vm259_vm1, %v2125_v54, 0.0 }
  0xd0   :  { %v198_v35 = vpop.f32.mrf.mxu0  ;;  %267 = vadd.xlane.f32.xlu1 %v266_v33  ;;  %264 = vadd.xlane.f32.xlu0 %v263_v34  ;;  %v1664_v39 = vpop.f32.mrf.mxu1 }
  0xd1   :  { %v199_v37 = vadd.f32 %v1495_v19, %v198_v35  ;;  %v275_v46 = vsel %vm259_vm1, %v2102_v36, 0.0  ;;  %v290_v57 = vsel %vm259_vm1, %v2119_v50, 0.0  ;;  %v2133_v59 = vadd.f32 %v1664_v39, %v1495_v19 }
  0xd2   :  { %v1655_v38 = vpop.f32.mrf.mxu0  ;;  %v238_v47 = vpop.f32.mrf.mxu1 }
  0xd3   :  { %v272_v41 = vsel %vm259_vm1, %v199_v37, 0.0  ;;  %v2107_v43 = vadd.f32 %v1655_v38, %v1495_v19  ;;  %v2127_v55 = vadd.f32 %v1495_v19, %v238_v47  ;;  %v299_v0 = vsel %vm259_vm1, %v2133_v59, 0.0 }
  0xd4   :  { %v208_v42 = vpop.f32.mrf.mxu0  ;;  %270 = vadd.xlane.f32.xlu1 %v269_v40  ;;  %273 = vadd.xlane.f32.xlu0 %v272_v41  ;;  %v1667_v53 = vpop.f32.mrf.mxu1 }
  0xd5   :  { %v2109_v44 = vadd.f32 %v1495_v19, %v208_v42  ;;  %v281_v51 = vsel %vm259_vm1, %v2107_v43, 0.0  ;;  %v296_v62 = vsel %vm259_vm1, %v2127_v55, 0.0  ;;  %v2141_v63 = vadd.f32 %v1667_v53, %v1495_v19 }
  0xd6   :  { %v248_v58 = vpop.f32.mrf.mxu1 }
  0xd7   :  { %v278_v48 = vsel %vm259_vm1, %v2109_v44, 0.0  ;;  %v2135_v60 = vadd.f32 %v1495_v19, %v248_v58  ;;  %v305_v2 = vsel %vm259_vm1, %v2141_v63, 0.0 }
  0xd8   :  { %276 = vadd.xlane.f32.xlu1 %v275_v46  ;;  %279 = vadd.xlane.f32.xlu0 %v278_v48 }
  0xd9   :  { %v302_v1 = vsel %vm259_vm1, %v2135_v60, 0.0 }
  0xdc   :  { %282 = vadd.xlane.f32.xlu1 %v281_v51  ;;  %285 = vadd.xlane.f32.xlu0 %v284_v52 }
  0xe0   :  { %288 = vadd.xlane.f32.xlu1 %v287_v56  ;;  %291 = vadd.xlane.f32.xlu0 %v290_v57 }
  0xe4   :  { %294 = vadd.xlane.f32.xlu1 %v293_v61  ;;  %297 = vadd.xlane.f32.xlu0 %v296_v62 }
  0xe8   :  { %300 = vadd.xlane.f32.xlu1 %v299_v0  ;;  %303 = vadd.xlane.f32.xlu0 %v302_v1 }
  0xec   :  { %306 = vadd.xlane.f32.xlu1 %v305_v2 }
 0x155   :  { %v262_v3 = vpop.xlane.xlu0 %261 }
 0x156   :  { %v309_v4 = vmul.f32 0.03125, %v262_v3 }
 0x158   :  { %v2150_v5 = vsub.f32 %v2091_v22, %v309_v4 }
 0x159   :  { %v268_v6 = vpop.xlane.xlu1 %267  ;;  %v265_v7 = vpop.xlane.xlu0 %264 }
 0x15a   :  { %v311_v8 = vmul.f32 0.03125, %v268_v6  ;;  %v310_v9 = vmul.f32 0.03125, %v265_v7  ;;  %v341_v10 = vmul.f32 %v2150_v5, %v2150_v5 }
 0x15c   :  { %v2154_v11 = vsub.f32 %v189_v29, %v311_v8  ;;  %v2157_v12 = vsub.f32 %v2093_v25, %v310_v9  ;;  %v357_v13 = vsel %vm259_vm1, %v341_v10, 0.0 }
 0x15d   :  { %v271_v14 = vpop.xlane.xlu1 %270  ;;  %358 = vadd.xlane.f32.xlu0 %v357_v13  ;;  %v274_v15 = vpop.xlane.xlu0 %273 }
 0x15e   :  { %v312_v16 = vmul.f32 0.03125, %v271_v14  ;;  %v313_v17 = vmul.f32 0.03125, %v274_v15  ;;  %v343_v18 = vmul.f32 %v2154_v11, %v2154_v11  ;;  %v342_v19 = vmul.f32 %v2157_v12, %v2157_v12 }
 0x160   :  { %v2165_v20 = vsub.f32 %v2097_v32, %v312_v16  ;;  %v2167_v21 = vsub.f32 %v199_v37, %v313_v17  ;;  %v363_v22 = vsel %vm259_vm1, %v343_v18, 0.0  ;;  %v360_v23 = vsel %vm259_vm1, %v342_v19, 0.0 }
 0x161   :  { %v277_v24 = vpop.xlane.xlu1 %276  ;;  %364 = vadd.xlane.f32.xlu0 %v363_v22  ;;  %361 = vadd.xlane.f32.xlu1 %v360_v23  ;;  %v280_v25 = vpop.xlane.xlu0 %279 }
 0x162   :  { %v314_v26 = vmul.f32 0.03125, %v277_v24  ;;  %v315_v27 = vmul.f32 0.03125, %v280_v25  ;;  %v344_v28 = vmul.f32 %v2165_v20, %v2165_v20  ;;  %v345_v29 = vmul.f32 %v2167_v21, %v2167_v21  ;;  %v628_v25 = vld [vmem:[%s2760_s5 + $0x18] sm:$0xff] }
 0x163   :  { %1668 = vmatprep.subr.mxu1 %v628_v25 }
 0x164   :  { %v2176_v30 = vsub.f32 %v2102_v36, %v314_v26  ;;  %v2179_v31 = vsub.f32 %v2109_v44, %v315_v27  ;;  %v366_v32 = vsel %vm259_vm1, %v344_v28, 0.0  ;;  %v369_v33 = vsel %vm259_vm1, %v345_v29, 0.0  ;;  %1669 = vmatpush3.msra.mxu1 %v628_v25  ;;  %v626_v26 = vld [vmem:[%s2760_s5 + $0x8] sm:$0xff]  ;;  %v625_v27 = vld [vmem:[%s2760_s5] sm:$0xff] }
 0x165   :  { %v283_v34 = vpop.xlane.xlu1 %282  ;;  %367 = vadd.xlane.f32.xlu1 %v366_v32  ;;  %370 = vadd.xlane.f32.xlu0 %v369_v33  ;;  %v286_v35 = vpop.xlane.xlu0 %285 }
 0x166   :  { %v316_v37 = vmul.f32 0.03125, %v283_v34  ;;  %v317_v38 = vmul.f32 0.03125, %v286_v35  ;;  %v346_v39 = vmul.f32 %v2176_v30, %v2176_v30  ;;  %v347_v36 = vmul.f32 %v2179_v31, %v2179_v31 }
 0x168   :  { %v2188_v40 = vsub.f32 %v2107_v43, %v316_v37  ;;  %v2191_v41 = vsub.f32 %v2111_v45, %v317_v38  ;;  %v372_v42 = vsel %vm259_vm1, %v346_v39, 0.0  ;;  %v375_v44 = vsel %vm259_vm1, %v347_v36, 0.0 }
 0x169   :  { %v289_v46 = vpop.xlane.xlu1 %288  ;;  %373 = vadd.xlane.f32.xlu1 %v372_v42  ;;  %376 = vadd.xlane.f32.xlu0 %v375_v44  ;;  %v292_v47 = vpop.xlane.xlu0 %291 }
 0x16a   :  { %v318_v48 = vmul.f32 0.03125, %v289_v46  ;;  %v319_v51 = vmul.f32 0.03125, %v292_v47  ;;  %v348_v52 = vmul.f32 %v2188_v40, %v2188_v40  ;;  %v349_v43 = vmul.f32 %v2191_v41, %v2191_v41 }
 0x16c   :  { %v2200_v53 = vsub.f32 %v2117_v49, %v318_v48  ;;  %v2203_v45 = vsub.f32 %v2119_v50, %v319_v51  ;;  %v378_v56 = vsel %vm259_vm1, %v348_v52, 0.0  ;;  %v381_v57 = vsel %vm259_vm1, %v349_v43, 0.0 }
 0x16d   :  { %v295_v58 = vpop.xlane.xlu1 %294  ;;  %379 = vadd.xlane.f32.xlu1 %v378_v56  ;;  %382 = vadd.xlane.f32.xlu0 %v381_v57  ;;  %v298_v61 = vpop.xlane.xlu0 %297 }
 0x16e   :  { %v320_v62 = vmul.f32 0.03125, %v295_v58  ;;  %v321_v0 = vmul.f32 0.03125, %v298_v61  ;;  %v350_v1 = vmul.f32 %v2200_v53, %v2200_v53  ;;  %v351_v49 = vmul.f32 %v2203_v45, %v2203_v45 }
 0x170   :  { %v2212_v2 = vsub.f32 %v2125_v54, %v320_v62  ;;  %v2215_v50 = vsub.f32 %v2127_v55, %v321_v0  ;;  %v384_v3 = vsel %vm259_vm1, %v350_v1, 0.0  ;;  %v387_v4 = vsel %vm259_vm1, %v351_v49, 0.0 }
 0x171   :  { %v301_v6 = vpop.xlane.xlu1 %300  ;;  %385 = vadd.xlane.f32.xlu1 %v384_v3  ;;  %388 = vadd.xlane.f32.xlu0 %v387_v4  ;;  %v304_v7 = vpop.xlane.xlu0 %303  ;;  %v2258_v3 = vld [vmem:[%s2761_s3] ss:$0 sm:$0xff]  ;;  %s1955_s3 = smov 96  }
 0x172   :  { %v322_v8 = vmul.f32 0.03125, %v301_v6  ;;  %v323_v9 = vmul.f32 0.03125, %v304_v7  ;;  %v352_v10 = vmul.f32 %v2212_v2, %v2212_v2  ;;  %v353_v54 = vmul.f32 %v2215_v50, %v2215_v50 }
 0x174   :  { %v2224_v13 = vsub.f32 %v2133_v59, %v322_v8  ;;  %v2227_v55 = vsub.f32 %v2135_v60, %v323_v9  ;;  %v390_v14 = vsel %vm259_vm1, %v352_v10, 0.0  ;;  %v393_v15 = vsel %vm259_vm1, %v353_v54, 0.0  ;;  %v2264_v10 = vld [vmem:[%s2762_s4] ss:$0 sm:$0xff]  ;;  %s1956_s4 = smov 120  }
 0x175   :  { %v307_v16 = vpop.xlane.xlu1 %306  ;;  %391 = vadd.xlane.f32.xlu1 %v390_v14  ;;  %394 = vadd.xlane.f32.xlu0 %v393_v15 }
 0x176   :  { %v324_v17 = vmul.f32 0.03125, %v307_v16  ;;  %v354_v18 = vmul.f32 %v2224_v13, %v2224_v13  ;;  %v355_v19 = vmul.f32 %v2227_v55, %v2227_v55 }
 0x178   :  { %v2236_v59 = vsub.f32 %v2141_v63, %v324_v17  ;;  %v396_v60 = vsel %vm259_vm1, %v354_v18, 0.0  ;;  %v399_v22 = vsel %vm259_vm1, %v355_v19, 0.0  ;;  %v627_v63 = vld [vmem:[%s2760_s5 + $0x10] sm:$0xff]  ;;  %s1951_s5 = smov 64  }
 0x179   :  { %397 = vadd.xlane.f32.xlu1 %v396_v60  ;;  %400 = vadd.xlane.f32.xlu0 %v399_v22 }
 0x17a   :  { %v356_v23 = vmul.f32 %v2236_v59, %v2236_v59  ;;  %1670 = vmatprep.subr.mxu1 %v627_v63 }
 0x17b   :  { %1671 = vmatpush3.msra.mxu1 %v627_v63 }
 0x17c   :  { %v402_v24 = vsel %vm259_vm1, %v356_v23, 0.0  ;;  %1672 = vmatprep.subr.mxu1 %v626_v26 }
 0x17d   :  { %403 = vadd.xlane.f32.xlu1 %v402_v24  ;;  %1673 = vmatpush3.msra.mxu1 %v626_v26 }
 0x17e   :  { %1674 = vmatprep.subr.mxu1 %v625_v27 }
 0x17f   :  { %1675 = vmatpush3.msra.mxu1 %v625_v27 }
 0x1e6   :  { %v359_v28 = vpop.xlane.xlu0 %358 }
 0x1e7   :  { %v405_v29 = vmul.f32 0.03125, %v359_v28 }
 0x1e9   :  { %v421_v32 = vadd.f32 1e-05, %v405_v29 }
 0x1ea   :  { %v362_v33 = vpop.xlane.xlu1 %361  ;;  %v365_v34 = vpop.xlane.xlu0 %364 }
 0x1eb   :  { %1751 = vrsqrt.f32 %v421_v32  ;;  %v406_v35 = vmul.f32 0.03125, %v362_v33  ;;  %v407_v37 = vmul.f32 0.03125, %v365_v34 }
 0x1ed   :  { %v422_v38 = vadd.f32 1e-05, %v406_v35  ;;  %v423_v39 = vadd.f32 1e-05, %v407_v37 }
 0x1ee   :  { %v368_v36 = vpop.xlane.xlu1 %367  ;;  %v371_v42 = vpop.xlane.xlu0 %370 }
 0x1ef   :  { %1753 = vrsqrt.f32 %v422_v38  ;;  %v408_v44 = vmul.f32 0.03125, %v368_v36  ;;  %v409_v46 = vmul.f32 0.03125, %v371_v42 }
 0x1f0   :  { %1755 = vrsqrt.f32 %v423_v39 }
 0x1f1   :  { %v424_v47 = vadd.f32 1e-05, %v408_v44  ;;  %v425_v48 = vadd.f32 1e-05, %v409_v46 }
 0x1f2   :  { %v374_v51 = vpop.xlane.xlu1 %373  ;;  %v377_v52 = vpop.xlane.xlu0 %376 }
 0x1f3   :  { %1757 = vrsqrt.f32 %v424_v47  ;;  %v410_v43 = vmul.f32 0.03125, %v374_v51  ;;  %v411_v56 = vmul.f32 0.03125, %v377_v52 }
 0x1f4   :  { %1759 = vrsqrt.f32 %v425_v48 }
 0x1f5   :  { %v426_v57 = vadd.f32 1e-05, %v410_v43  ;;  %v427_v58 = vadd.f32 1e-05, %v411_v56 }
 0x1f6   :  { %v380_v61 = vpop.xlane.xlu1 %379  ;;  %v383_v62 = vpop.xlane.xlu0 %382 }
 0x1f7   :  { %1761 = vrsqrt.f32 %v426_v57  ;;  %v412_v0 = vmul.f32 0.03125, %v380_v61  ;;  %v413_v1 = vmul.f32 0.03125, %v383_v62 }
 0x1f8   :  { %v1752_v49 = vpop.eup %1751  ;;  %1763 = vrsqrt.f32 %v427_v58 }
 0x1f9   :  { %v428_v4 = vadd.f32 1e-05, %v412_v0  ;;  %v429_v6 = vadd.f32 1e-05, %v413_v1  ;;  %v453_v7 = vmul.f32 %v1752_v49, %v2150_v5 }
 0x1fa   :  { %v386_v8 = vpop.xlane.xlu1 %385  ;;  %v389_v9 = vpop.xlane.xlu0 %388 }
 0x1fb   :  { %1765 = vrsqrt.f32 %v428_v4  ;;  %v414_v54 = vmul.f32 0.03125, %v386_v8  ;;  %v415_v14 = vmul.f32 0.03125, %v389_v9  ;;  %v475_v15 = vmul.f32 %v2258_v3, %v453_v7 }
 0x1fc   :  { %v1754_v16 = vpop.eup %1753  ;;  %1767 = vrsqrt.f32 %v429_v6 }
 0x1fd   :  { %v1756_v17 = vpop.eup %1755  ;;  %v454_v18 = vmul.f32 %v1754_v16, %v2157_v12  ;;  %v430_v19 = vadd.f32 1e-05, %v414_v54  ;;  %v431_v60 = vadd.f32 1e-05, %v415_v14  ;;  %v2269_v5 = vadd.f32 %v2264_v10, %v475_v15 }
 0x1fe   :  { %v392_v22 = vpop.xlane.xlu1 %391  ;;  %v395_v23 = vpop.xlane.xlu0 %394  ;;  %v455_v24 = vmul.f32 %v1756_v17, %v2154_v11 }
 0x1ff   :  { %v476_v25 = vmul.f32 %v2258_v3, %v454_v18  ;;  %1769 = vrsqrt.f32 %v430_v19  ;;  %v416_v63 = vmul.f32 0.03125, %v392_v22  ;;  %v417_v26 = vmul.f32 0.03125, %v395_v23 }
 0x200   :  { %v1758_v27 = vpop.eup %1757  ;;  %1771 = vrsqrt.f32 %v431_v60  ;;  %v1514_v28 = vmul.f32 -1.442695, %v2269_v5  ;;  %v477_v12 = vmul.f32 %v2258_v3, %v455_v24 }
 0x201   :  { %v1760_v29 = vpop.eup %1759  ;;  %v432_v32 = vadd.f32 1e-05, %v416_v63  ;;  %v433_v33 = vadd.f32 1e-05, %v417_v26  ;;  %v2276_v34 = vadd.f32 %v2264_v10, %v476_v25  ;;  %v456_v35 = vmul.f32 %v1758_v27, %v2165_v20 }
 0x202   :  { %v398_v11 = vpop.xlane.xlu1 %397  ;;  %v401_v37 = vpop.xlane.xlu0 %400  ;;  %1773 = vpow2.f32 %v1514_v28  ;;  %v2280_v38 = vadd.f32 %v2264_v10, %v477_v12  ;;  %v457_v39 = vmul.f32 %v1760_v29, %v2167_v21 }
 0x203   :  { %1775 = vrsqrt.f32 %v432_v32  ;;  %v418_v36 = vmul.f32 0.03125, %v398_v11  ;;  %v419_v42 = vmul.f32 0.03125, %v401_v37  ;;  %v1515_v44 = vmul.f32 -1.442695, %v2276_v34 }
 0x204   :  { %v1762_v46 = vpop.eup %1761  ;;  %1777 = vrsqrt.f32 %v433_v33  ;;  %v1516_v47 = vmul.f32 -1.442695, %v2280_v38  ;;  %v478_v48 = vmul.f32 %v2258_v3, %v456_v35  ;;  %v479_v20 = vmul.f32 %v2258_v3, %v457_v39 }
 0x205   :  { %v1764_v51 = vpop.eup %1763  ;;  %v434_v52 = vadd.f32 1e-05, %v418_v36  ;;  %v435_v43 = vadd.f32 1e-05, %v419_v42  ;;  %1779 = vpow2.f32 %v1515_v44  ;;  %v458_v56 = vmul.f32 %v1762_v46, %v2176_v30 }
 0x206   :  { %v404_v21 = vpop.xlane.xlu1 %403  ;;  %1781 = vpow2.f32 %v1516_v47  ;;  %v2289_v57 = vadd.f32 %v2264_v10, %v478_v48  ;;  %v2292_v58 = vadd.f32 %v2264_v10, %v479_v20  ;;  %v459_v61 = vmul.f32 %v1764_v51, %v2179_v31 }
 0x207   :  { %1783 = vrsqrt.f32 %v434_v52  ;;  %v420_v62 = vmul.f32 0.03125, %v404_v21  ;;  %v480_v0 = vmul.f32 %v2258_v3, %v458_v56 }
 0x208   :  { %v1766_v1 = vpop.eup %1765  ;;  %1785 = vrsqrt.f32 %v435_v43  ;;  %v1517_v49 = vmul.f32 -1.442695, %v2289_v57  ;;  %v1518_v30 = vmul.f32 -1.442695, %v2292_v58  ;;  %v481_v4 = vmul.f32 %v2258_v3, %v459_v61 }
 0x209   :  { %v1768_v6 = vpop.eup %1767  ;;  %v436_v7 = vadd.f32 1e-05, %v420_v62  ;;  %v2300_v8 = vadd.f32 %v2264_v10, %v480_v0  ;;  %v460_v9 = vmul.f32 %v1766_v1, %v2188_v40 }
 0x20a   :  { %1787 = vpow2.f32 %v1517_v49  ;;  %v2304_v31 = vadd.f32 %v2264_v10, %v481_v4  ;;  %v461_v54 = vmul.f32 %v1768_v6, %v2191_v41 }
 0x20b   :  { %1789 = vrsqrt.f32 %v436_v7  ;;  %v1519_v14 = vmul.f32 -1.442695, %v2300_v8  ;;  %v482_v15 = vmul.f32 %v2258_v3, %v460_v9 }
 0x20c   :  { %v1770_v16 = vpop.eup %1769  ;;  %1791 = vpow2.f32 %v1518_v30  ;;  %v1520_v17 = vmul.f32 -1.442695, %v2304_v31  ;;  %v483_v18 = vmul.f32 %v2258_v3, %v461_v54 }
 0x20d   :  { %v1772_v19 = vpop.eup %1771  ;;  %1793 = vpow2.f32 %v1519_v14  ;;  %v2312_v40 = vadd.f32 %v2264_v10, %v482_v15  ;;  %v462_v60 = vmul.f32 %v1770_v16, %v2200_v53 }
 0x20e   :  { %1795 = vpow2.f32 %v1520_v17  ;;  %v2316_v41 = vadd.f32 %v2264_v10, %v483_v18  ;;  %v463_v22 = vmul.f32 %v1772_v19, %v2203_v45 }
 0x20f   :  { %v1774_v23 = vpop.eup %1773  ;;  %v1521_v24 = vmul.f32 -1.442695, %v2312_v40  ;;  %v484_v25 = vmul.f32 %v2258_v3, %v462_v60 }
 0x210   :  { %v1776_v63 = vpop.eup %1775  ;;  %v561_v26 = vadd.f32 1.0, %v1774_v23  ;;  %v1522_v27 = vmul.f32 -1.442695, %v2316_v41  ;;  %v485_v28 = vmul.f32 %v2258_v3, %v463_v22 }
 0x211   :  { %v1778_v12 = vpop.eup %1777  ;;  %1797 = vpow2.f32 %v1521_v24  ;;  %v2324_v53 = vadd.f32 %v2264_v10, %v484_v25  ;;  %v464_v29 = vmul.f32 %v1776_v63, %v2212_v2 }
 0x212   :  { %v1780_v32 = vpop.eup %1779  ;;  %1799 = vrcp.f32 %v561_v26  ;;  %v2328_v45 = vadd.f32 %v2264_v10, %v485_v28  ;;  %v465_v33 = vmul.f32 %v1778_v12, %v2215_v50 }
 0x213   :  { %v1782_v35 = vpop.eup %1781  ;;  %v562_v11 = vadd.f32 1.0, %v1780_v32  ;;  %1801 = vpow2.f32 %v1522_v27  ;;  %v1523_v37 = vmul.f32 -1.442695, %v2324_v53  ;;  %v486_v39 = vmul.f32 %v2258_v3, %v464_v29 }
 0x214   :  { %v1784_v36 = vpop.eup %1783  ;;  %v563_v42 = vadd.f32 1.0, %v1782_v35  ;;  %v1524_v44 = vmul.f32 -1.442695, %v2328_v45  ;;  %v487_v2 = vmul.f32 %v2258_v3, %v465_v33 }
 0x215   :  { %v1786_v46 = vpop.eup %1785  ;;  %1803 = vrcp.f32 %v562_v11  ;;  %v2336_v47 = vadd.f32 %v2264_v10, %v486_v39  ;;  %v466_v50 = vmul.f32 %v1784_v36, %v2224_v13 }
 0x216   :  { %1805 = vrcp.f32 %v563_v42  ;;  %v2340_v48 = vadd.f32 %v2264_v10, %v487_v2  ;;  %v467_v20 = vmul.f32 %v1786_v46, %v2227_v55 }
 0x217   :  { %v1788_v51 = vpop.eup %1787  ;;  %1807 = vpow2.f32 %v1523_v37  ;;  %v1525_v52 = vmul.f32 -1.442695, %v2336_v47  ;;  %v488_v43 = vmul.f32 %v2258_v3, %v466_v50 }
 0x218   :  { %v1790_v56 = vpop.eup %1789  ;;  %v564_v21 = vadd.f32 1.0, %v1788_v51  ;;  %1809 = vpow2.f32 %v1524_v44  ;;  %v1526_v61 = vmul.f32 -1.442695, %v2340_v48  ;;  %v489_v62 = vmul.f32 %v2258_v3, %v467_v20 }
 0x219   :  { %v1792_v13 = vpop.eup %1791  ;;  %1811 = vpow2.f32 %v1525_v52  ;;  %v2348_v0 = vadd.f32 %v2264_v10, %v488_v43  ;;  %v468_v55 = vmul.f32 %v1790_v56, %v2236_v59 }
 0x21a   :  { %v1794_v1 = vpop.eup %1793  ;;  %1813 = vrcp.f32 %v564_v21  ;;  %v565_v49 = vadd.f32 1.0, %v1792_v13  ;;  %v2352_v30 = vadd.f32 %v2264_v10, %v489_v62 }
 0x21b   :  { %v1796_v4 = vpop.eup %1795  ;;  %v566_v6 = vadd.f32 1.0, %v1794_v1  ;;  %1815 = vpow2.f32 %v1526_v61  ;;  %v1527_v7 = vmul.f32 -1.442695, %v2348_v0  ;;  %v490_v9 = vmul.f32 %v2258_v3, %v468_v55 }
 0x21c   :  { %1817 = vrcp.f32 %v565_v49  ;;  %v567_v54 = vadd.f32 1.0, %v1796_v4  ;;  %v1528_v14 = vmul.f32 -1.442695, %v2352_v30 }
 0x21d   :  { %1819 = vrcp.f32 %v566_v6  ;;  %v2358_v59 = vadd.f32 %v2264_v10, %v490_v9 }
 0x21e   :  { %v1798_v15 = vpop.eup %1797  ;;  %1821 = vrcp.f32 %v567_v54 }
 0x21f   :  { %v1800_v16 = vpop.eup %1799  ;;  %v568_v17 = vadd.f32 1.0, %v1798_v15  ;;  %1823 = vpow2.f32 %v1527_v7  ;;  %v1529_v18 = vmul.f32 -1.442695, %v2358_v59 }
 0x220   :  { %v1802_v19 = vpop.eup %1801  ;;  %v609_v60 = vmul.f32 %v1800_v16, %v2269_v5  ;;  %1825 = vpow2.f32 %v1528_v14 }
 0x221   :  { %1827 = vrcp.f32 %v568_v17  ;;  %v569_v3 = vadd.f32 1.0, %v1802_v19 }
 0x222   :  { %v1804_v22 = vpop.eup %1803  ;;  %1676 = vmatprep.mubr.msk.f32.mxu1 %vm259_vm1, %v609_v60  ;;  %1829 = vpow2.f32 %v1529_v18 }
 0x223   :  { %v1806_v23 = vpop.eup %1805  ;;  %v610_v10 = vmul.f32 %v1804_v22, %v2276_v34  ;;  %1831 = vrcp.f32 %v569_v3 }
 0x224   :  { %v1808_v24 = vpop.eup %1807  ;;  %v611_v25 = vmul.f32 %v1806_v23, %v2280_v38 }
 0x225   :  { %v1810_v63 = vpop.eup %1809  ;;  %1677 = vmatmul.mubr.msk.f32.vlgmr.msra.gmra.mxu1 %vm259_vm1, %v610_v10  ;;  %v570_v26 = vadd.f32 1.0, %v1808_v24 }
 0x226   :  { %v1812_v27 = vpop.eup %1811  ;;  %1679 = vmatprep.mubr.msk.f32.mxu1 %vm259_vm1, %v611_v25  ;;  %v571_v5 = vadd.f32 1.0, %v1810_v63 }
 0x227   :  { %v1814_v28 = vpop.eup %1813  ;;  %1833 = vrcp.f32 %v570_v26  ;;  %v572_v12 = vadd.f32 1.0, %v1812_v27 }
 0x228   :  { %v1816_v29 = vpop.eup %1815  ;;  %v612_v32 = vmul.f32 %v1814_v28, %v2289_v57  ;;  %1835 = vrcp.f32 %v571_v5 }
 0x229   :  { %v1818_v34 = vpop.eup %1817  ;;  %1837 = vrcp.f32 %v572_v12  ;;  %v573_v33 = vadd.f32 1.0, %v1816_v29 }
 0x22a   :  { %v1820_v35 = vpop.eup %1819  ;;  %1680 = vmatmul.mubr.msk.f32.gmra.mxu1 %vm259_vm1, %v612_v32  ;;  %v613_v38 = vmul.f32 %v1818_v34, %v2292_v58 }
 0x22b   :  { %v1822_v11 = vpop.eup %1821  ;;  %v614_v37 = vmul.f32 %v1820_v35, %v2300_v8  ;;  %1839 = vrcp.f32 %v573_v33 }
 0x22c   :  { %v1824_v39 = vpop.eup %1823  ;;  %1682 = vmatprep.mubr.msk.f32.mxu1 %vm259_vm1, %v613_v38  ;;  %v615_v36 = vmul.f32 %v1822_v11, %v2304_v31 }
 0x22d   :  { %v1826_v42 = vpop.eup %1825  ;;  %v574_v57 = vadd.f32 1.0, %v1824_v39 }
 0x22e   :  { %v1828_v44 = vpop.eup %1827  ;;  %1683 = vmatmul.mubr.msk.f32.gmra.mxu1 %vm259_vm1, %v614_v37  ;;  %v575_v2 = vadd.f32 1.0, %v1826_v42 }
 0x22f   :  { %v1830_v46 = vpop.eup %1829  ;;  %1685 = vmatprep.mubr.msk.f32.mxu1 %vm259_vm1, %v615_v36  ;;  %v616_v58 = vmul.f32 %v1828_v44, %v2312_v40  ;;  %1841 = vrcp.f32 %v574_v57 }
 0x230   :  { %v1832_v50 = vpop.eup %1831  ;;  %1843 = vrcp.f32 %v575_v2  ;;  %v576_v8 = vadd.f32 1.0, %v1830_v46 }
 0x231   :  { %v617_v20 = vmul.f32 %v1832_v50, %v2316_v41 }
 0x232   :  { %1686 = vmatmul.mubr.msk.f32.gmra.mxu1 %vm259_vm1, %v616_v58  ;;  %1845 = vrcp.f32 %v576_v8 }
 0x233   :  { %1688 = vmatprep.mubr.msk.f32.mxu1 %vm259_vm1, %v617_v20 }
 0x234   :  { %v1834_v31 = vpop.eup %1833 }
 0x235   :  { %v1836_v51 = vpop.eup %1835  ;;  %v618_v52 = vmul.f32 %v1834_v31, %v2324_v53 }
 0x236   :  { %v1838_v43 = vpop.eup %1837  ;;  %v619_v56 = vmul.f32 %v1836_v51, %v2328_v45 }
 0x237   :  { %1689 = vmatmul.mubr.msk.f32.gmra.mxu1 %vm259_vm1, %v618_v52  ;;  %v620_v40 = vmul.f32 %v1838_v43, %v2336_v47 }
 0x238   :  { %v1840_v21 = vpop.eup %1839  ;;  %1691 = vmatprep.mubr.msk.f32.mxu1 %vm259_vm1, %v619_v56 }
 0x239   :  { %v621_v41 = vmul.f32 %v1840_v21, %v2340_v48  ;;  %v1530_v48 = vld [vmem:[%s2763_s6] ss:$0 sm:$0xff]  ;;  %s1957_s6 = smov 112  }
 0x23b   :  { %1692 = vmatmul.mubr.msk.f32.gmra.mxu1 %vm259_vm1, %v620_v40 }
 0x23c   :  { %v1842_v61 = vpop.eup %1841  ;;  %1694 = vmatprep.mubr.msk.f32.mxu1 %vm259_vm1, %v621_v41 }
 0x23d   :  { %v1844_v62 = vpop.eup %1843  ;;  %v622_v53 = vmul.f32 %v1842_v61, %v2348_v0 }
 0x23e   :  { %v623_v13 = vmul.f32 %v1844_v62, %v2352_v30 }
 0x23f   :  { %v1846_v45 = vpop.eup %1845  ;;  %1695 = vmatmul.mubr.msk.f32.gmra.mxu1 %vm259_vm1, %v622_v53 }
 0x240   :  { %1697 = vmatprep.mubr.msk.f32.mxu1 %vm259_vm1, %v623_v13  ;;  %v624_v47 = vmul.f32 %v1846_v45, %v2358_v59 }
 0x243   :  { %1698 = vmatmul.mubr.msk.f32.gmra.mxu1 %vm259_vm1, %v624_v47 }
 0x2e5   :  { %v1678_v55 = vpop.f32.mrf.mxu1 }
 0x2e6   :  { %v2396_v1 = vadd.f32 %v1678_v55, %v1530_v48 }
 0x2e7   :  { %v750_v49 = vpop.f32.mrf.mxu1 }
 0x2e8   :  { %v2398_v0 = vadd.f32 %v1530_v48, %v750_v49  ;;  %v834_v30 = vsel %vm259_vm1, %v2396_v1, 0.0 }
 0x2e9   :  { %835 = vadd.xlane.f32.xlu1 %v834_v30 }
 0x2ea   :  { %v1681_v4 = vpop.f32.mrf.mxu1  ;;  %v831_v6 = vsel %vm259_vm1, %v2398_v0, 0.0 }
 0x2eb   :  { %v2404_v7 = vadd.f32 %v1681_v4, %v1530_v48  ;;  %832 = vadd.xlane.f32.xlu0 %v831_v6 }
 0x2ec   :  { %v760_v9 = vpop.f32.mrf.mxu1 }
 0x2ed   :  { %v2406_v54 = vadd.f32 %v1530_v48, %v760_v9  ;;  %v840_v14 = vsel %vm259_vm1, %v2404_v7, 0.0 }
 0x2ee   :  { %841 = vadd.xlane.f32.xlu1 %v840_v14  ;;  %v1684_v59 = vpop.f32.mrf.mxu1 }
 0x2ef   :  { %v2410_v15 = vadd.f32 %v1684_v59, %v1530_v48  ;;  %v837_v16 = vsel %vm259_vm1, %v2406_v54, 0.0 }
 0x2f0   :  { %838 = vadd.xlane.f32.xlu0 %v837_v16  ;;  %v770_v17 = vpop.f32.mrf.mxu1 }
 0x2f1   :  { %v2414_v18 = vadd.f32 %v1530_v48, %v770_v17  ;;  %v846_v19 = vsel %vm259_vm1, %v2410_v15, 0.0 }
 0x2f2   :  { %847 = vadd.xlane.f32.xlu1 %v846_v19  ;;  %v1687_v60 = vpop.f32.mrf.mxu1 }
 0x2f3   :  { %v2418_v3 = vadd.f32 %v1687_v60, %v1530_v48  ;;  %v843_v22 = vsel %vm259_vm1, %v2414_v18, 0.0 }
 0x2f4   :  { %844 = vadd.xlane.f32.xlu0 %v843_v22  ;;  %v780_v23 = vpop.f32.mrf.mxu1 }
 0x2f5   :  { %v2422_v10 = vadd.f32 %v1530_v48, %v780_v23  ;;  %v852_v24 = vsel %vm259_vm1, %v2418_v3, 0.0 }
 0x2f6   :  { %853 = vadd.xlane.f32.xlu1 %v852_v24 }
 0x2f7   :  { %v1690_v25 = vpop.f32.mrf.mxu1  ;;  %v849_v63 = vsel %vm259_vm1, %v2422_v10, 0.0 }
 0x2f8   :  { %v2428_v26 = vadd.f32 %v1690_v25, %v1530_v48  ;;  %850 = vadd.xlane.f32.xlu0 %v849_v63 }
 0x2f9   :  { %v790_v27 = vpop.f32.mrf.mxu1 }
 0x2fa   :  { %v2430_v5 = vadd.f32 %v1530_v48, %v790_v27  ;;  %v858_v28 = vsel %vm259_vm1, %v2428_v26, 0.0 }
 0x2fb   :  { %859 = vadd.xlane.f32.xlu1 %v858_v28  ;;  %v1693_v12 = vpop.f32.mrf.mxu1 }
 0x2fc   :  { %v2434_v29 = vadd.f32 %v1693_v12, %v1530_v48  ;;  %v855_v32 = vsel %vm259_vm1, %v2430_v5, 0.0 }
 0x2fd   :  { %856 = vadd.xlane.f32.xlu0 %v855_v32  ;;  %v800_v34 = vpop.f32.mrf.mxu1 }
 0x2fe   :  { %v2438_v33 = vadd.f32 %v1530_v48, %v800_v34  ;;  %v864_v35 = vsel %vm259_vm1, %v2434_v29, 0.0 }
 0x2ff   :  { %865 = vadd.xlane.f32.xlu1 %v864_v35  ;;  %v1696_v38 = vpop.f32.mrf.mxu1 }
 0x300   :  { %v2442_v11 = vadd.f32 %v1696_v38, %v1530_v48  ;;  %v861_v37 = vsel %vm259_vm1, %v2438_v33, 0.0 }
 0x301   :  { %862 = vadd.xlane.f32.xlu0 %v861_v37  ;;  %v810_v39 = vpop.f32.mrf.mxu1 }
 0x302   :  { %v2446_v36 = vadd.f32 %v1530_v48, %v810_v39  ;;  %v870_v42 = vsel %vm259_vm1, %v2442_v11, 0.0 }
 0x303   :  { %871 = vadd.xlane.f32.xlu1 %v870_v42  ;;  %v1699_v57 = vpop.f32.mrf.mxu1 }
 0x304   :  { %v2450_v44 = vadd.f32 %v1699_v57, %v1530_v48  ;;  %v867_v2 = vsel %vm259_vm1, %v2446_v36, 0.0 }
 0x305   :  { %868 = vadd.xlane.f32.xlu0 %v867_v2  ;;  %v820_v46 = vpop.f32.mrf.mxu1 }
 0x306   :  { %v2454_v58 = vadd.f32 %v1530_v48, %v820_v46  ;;  %v876_v50 = vsel %vm259_vm1, %v2450_v44, 0.0 }
 0x307   :  { %877 = vadd.xlane.f32.xlu1 %v876_v50 }
 0x308   :  { %v873_v8 = vsel %vm259_vm1, %v2454_v58, 0.0 }
 0x309   :  { %874 = vadd.xlane.f32.xlu0 %v873_v8 }
 0x372   :  { %v836_v20 = vpop.xlane.xlu1 %835 }
 0x373   :  { %v880_v31 = vmul.f32 0.03125, %v836_v20 }
 0x374   :  { %v833_v51 = vpop.xlane.xlu0 %832 }
 0x375   :  { %v2461_v52 = vsub.f32 %v2396_v1, %v880_v31  ;;  %v879_v43 = vmul.f32 0.03125, %v833_v51 }
 0x377   :  { %v2464_v56 = vsub.f32 %v2398_v0, %v879_v43  ;;  %v842_v40 = vpop.xlane.xlu1 %841  ;;  %v912_v21 = vmul.f32 %v2461_v52, %v2461_v52 }
 0x378   :  { %v882_v41 = vmul.f32 0.03125, %v842_v40 }
 0x379   :  { %v839_v61 = vpop.xlane.xlu0 %838  ;;  %v930_v62 = vsel %vm259_vm1, %v912_v21, 0.0  ;;  %v911_v53 = vmul.f32 %v2464_v56, %v2464_v56 }
 0x37a   :  { %v2472_v13 = vsub.f32 %v2404_v7, %v882_v41  ;;  %v881_v45 = vmul.f32 0.03125, %v839_v61  ;;  %931 = vadd.xlane.f32.xlu1 %v930_v62 }
 0x37b   :  { %v848_v47 = vpop.xlane.xlu1 %847  ;;  %v927_v48 = vsel %vm259_vm1, %v911_v53, 0.0 }
 0x37c   :  { %v2476_v55 = vsub.f32 %v2406_v54, %v881_v45  ;;  %v884_v1 = vmul.f32 0.03125, %v848_v47  ;;  %928 = vadd.xlane.f32.xlu0 %v927_v48  ;;  %v914_v49 = vmul.f32 %v2472_v13, %v2472_v13 }
 0x37d   :  { %v845_v0 = vpop.xlane.xlu0 %844 }
 0x37e   :  { %v2481_v30 = vsub.f32 %v2410_v15, %v884_v1  ;;  %v883_v4 = vmul.f32 0.03125, %v845_v0  ;;  %v936_v6 = vsel %vm259_vm1, %v914_v49, 0.0  ;;  %v913_v7 = vmul.f32 %v2476_v55, %v2476_v55 }
 0x37f   :  { %v854_v9 = vpop.xlane.xlu1 %853  ;;  %937 = vadd.xlane.f32.xlu1 %v936_v6  ;;  %v1197_v6 = vld [vmem:[%s2764_s9 + $0x10] sm:$0xff] }
 0x380   :  { %v2487_v54 = vsub.f32 %v2414_v18, %v883_v4  ;;  %v886_v14 = vmul.f32 0.03125, %v854_v9  ;;  %v933_v59 = vsel %vm259_vm1, %v913_v7, 0.0  ;;  %v916_v16 = vmul.f32 %v2481_v30, %v2481_v30  ;;  %v1196_v7 = vld [vmem:[%s2764_s9 + $0x8] sm:$0xff]  ;;  %v1195_v9 = vld [vmem:[%s2764_s9] sm:$0xff] }
 0x381   :  { %934 = vadd.xlane.f32.xlu0 %v933_v59  ;;  %v851_v15 = vpop.xlane.xlu0 %850 }
 0x382   :  { %v2493_v17 = vsub.f32 %v2418_v3, %v886_v14  ;;  %v885_v19 = vmul.f32 0.03125, %v851_v15  ;;  %v942_v60 = vsel %vm259_vm1, %v916_v16, 0.0  ;;  %v915_v22 = vmul.f32 %v2487_v54, %v2487_v54 }
 0x383   :  { %943 = vadd.xlane.f32.xlu1 %v942_v60 }
 0x384   :  { %v2499_v18 = vsub.f32 %v2422_v10, %v885_v19  ;;  %v860_v23 = vpop.xlane.xlu1 %859  ;;  %v939_v24 = vsel %vm259_vm1, %v915_v22, 0.0  ;;  %v918_v25 = vmul.f32 %v2493_v17, %v2493_v17 }
 0x385   :  { %v888_v63 = vmul.f32 0.03125, %v860_v23  ;;  %940 = vadd.xlane.f32.xlu0 %v939_v24 }
 0x386   :  { %v857_v3 = vpop.xlane.xlu0 %856  ;;  %v948_v27 = vsel %vm259_vm1, %v918_v25, 0.0  ;;  %v917_v28 = vmul.f32 %v2499_v18, %v2499_v18 }
 0x387   :  { %v2508_v12 = vsub.f32 %v2428_v26, %v888_v63  ;;  %v887_v32 = vmul.f32 0.03125, %v857_v3  ;;  %949 = vadd.xlane.f32.xlu1 %v948_v27 }
 0x388   :  { %v866_v10 = vpop.xlane.xlu1 %865  ;;  %v945_v34 = vsel %vm259_vm1, %v917_v28, 0.0 }
 0x389   :  { %v2512_v35 = vsub.f32 %v2430_v5, %v887_v32  ;;  %v890_v38 = vmul.f32 0.03125, %v866_v10  ;;  %946 = vadd.xlane.f32.xlu0 %v945_v34  ;;  %v920_v37 = vmul.f32 %v2508_v12, %v2508_v12 }
 0x38a   :  { %v863_v39 = vpop.xlane.xlu0 %862 }
 0x38b   :  { %v2517_v42 = vsub.f32 %v2434_v29, %v890_v38  ;;  %v889_v57 = vmul.f32 0.03125, %v863_v39  ;;  %v954_v26 = vsel %vm259_vm1, %v920_v37, 0.0  ;;  %v919_v2 = vmul.f32 %v2512_v35, %v2512_v35 }
 0x38c   :  { %v872_v46 = vpop.xlane.xlu1 %871  ;;  %955 = vadd.xlane.f32.xlu1 %v954_v26 }
 0x38d   :  { %v2523_v5 = vsub.f32 %v2438_v33, %v889_v57  ;;  %v892_v50 = vmul.f32 0.03125, %v872_v46  ;;  %v951_v8 = vsel %vm259_vm1, %v919_v2, 0.0  ;;  %v922_v20 = vmul.f32 %v2517_v42, %v2517_v42 }
 0x38e   :  { %952 = vadd.xlane.f32.xlu0 %v951_v8  ;;  %v869_v29 = vpop.xlane.xlu0 %868 }
 0x38f   :  { %v2529_v31 = vsub.f32 %v2442_v11, %v892_v50  ;;  %v891_v51 = vmul.f32 0.03125, %v869_v29  ;;  %v960_v43 = vsel %vm259_vm1, %v922_v20, 0.0  ;;  %v921_v40 = vmul.f32 %v2523_v5, %v2523_v5  ;;  %v2571_v50 = vld [vmem:[%s2765_s7] ss:$0 sm:$0xff] }
 0x390   :  { %961 = vadd.xlane.f32.xlu1 %v960_v43  ;;  %v878_v33 = vpop.xlane.xlu1 %877 }
 0x391   :  { %v2535_v21 = vsub.f32 %v2446_v36, %v891_v51  ;;  %v894_v41 = vmul.f32 0.03125, %v878_v33  ;;  %v957_v61 = vsel %vm259_vm1, %v921_v40, 0.0  ;;  %v924_v62 = vmul.f32 %v2529_v31, %v2529_v31 }
 0x392   :  { %958 = vadd.xlane.f32.xlu0 %v957_v61  ;;  %v875_v11 = vpop.xlane.xlu0 %874 }
 0x393   :  { %v2541_v53 = vsub.f32 %v2450_v44, %v894_v41  ;;  %v893_v45 = vmul.f32 0.03125, %v875_v11  ;;  %v966_v47 = vsel %vm259_vm1, %v924_v62, 0.0  ;;  %v923_v48 = vmul.f32 %v2535_v21, %v2535_v21  ;;  %v2578_v62 = vld [vmem:[%s2766_s8] ss:$0 sm:$0xff] }
 0x394   :  { %967 = vadd.xlane.f32.xlu1 %v966_v47 }
 0x395   :  { %v2547_v36 = vsub.f32 %v2454_v58, %v893_v45  ;;  %v963_v1 = vsel %vm259_vm1, %v923_v48, 0.0  ;;  %v926_v49 = vmul.f32 %v2541_v53, %v2541_v53  ;;  %v1198_v58 = vld [vmem:[%s2764_s9 + $0x18] sm:$0xff] }
 0x396   :  { %964 = vadd.xlane.f32.xlu0 %v963_v1  ;;  %1700 = vmatprep.subr.mxu0 %v1198_v58 }
 0x397   :  { %v972_v0 = vsel %vm259_vm1, %v926_v49, 0.0  ;;  %v925_v44 = vmul.f32 %v2547_v36, %v2547_v36  ;;  %1701 = vmatpush3.msra.mxu0 %v1198_v58 }
 0x398   :  { %973 = vadd.xlane.f32.xlu1 %v972_v0  ;;  %1702 = vmatprep.subr.mxu0 %v1197_v6 }
 0x399   :  { %v969_v4 = vsel %vm259_vm1, %v925_v44, 0.0  ;;  %1703 = vmatpush3.msra.mxu0 %v1197_v6 }
 0x39a   :  { %970 = vadd.xlane.f32.xlu0 %v969_v4  ;;  %1704 = vmatprep.subr.mxu0 %v1196_v7 }
 0x39b   :  { %1705 = vmatpush3.msra.mxu0 %v1196_v7 }
 0x39c   :  { %1706 = vmatprep.subr.mxu0 %v1195_v9 }
 0x39d   :  { %1707 = vmatpush3.msra.mxu0 %v1195_v9 }
 0x403   :  { %v932_v14 = vpop.xlane.xlu1 %931 }
 0x404   :  { %v976_v59 = vmul.f32 0.03125, %v932_v14 }
 0x405   :  { %v929_v16 = vpop.xlane.xlu0 %928 }
 0x406   :  { %v992_v15 = vadd.f32 1e-05, %v976_v59  ;;  %v975_v19 = vmul.f32 0.03125, %v929_v16 }
 0x408   :  { %1847 = vrsqrt.f32 %v992_v15  ;;  %v991_v60 = vadd.f32 1e-05, %v975_v19  ;;  %v938_v22 = vpop.xlane.xlu1 %937 }
 0x409   :  { %v978_v23 = vmul.f32 0.03125, %v938_v22 }
 0x40a   :  { %1849 = vrsqrt.f32 %v991_v60  ;;  %v935_v24 = vpop.xlane.xlu0 %934 }
 0x40b   :  { %v994_v25 = vadd.f32 1e-05, %v978_v23  ;;  %v977_v63 = vmul.f32 0.03125, %v935_v24 }
 0x40c   :  { %v944_v3 = vpop.xlane.xlu1 %943 }
 0x40d   :  { %1851 = vrsqrt.f32 %v994_v25  ;;  %v993_v27 = vadd.f32 1e-05, %v977_v63  ;;  %v980_v28 = vmul.f32 0.03125, %v944_v3 }
 0x40e   :  { %v941_v32 = vpop.xlane.xlu0 %940 }
 0x40f   :  { %1853 = vrsqrt.f32 %v993_v27  ;;  %v996_v10 = vadd.f32 1e-05, %v980_v28  ;;  %v979_v34 = vmul.f32 0.03125, %v941_v32 }
 0x410   :  { %v950_v38 = vpop.xlane.xlu1 %949 }
 0x411   :  { %1855 = vrsqrt.f32 %v996_v10  ;;  %v995_v37 = vadd.f32 1e-05, %v979_v34  ;;  %v982_v39 = vmul.f32 0.03125, %v950_v38 }
 0x412   :  { %v947_v57 = vpop.xlane.xlu0 %946 }
 0x413   :  { %1857 = vrsqrt.f32 %v995_v37  ;;  %v998_v26 = vadd.f32 1e-05, %v982_v39  ;;  %v981_v2 = vmul.f32 0.03125, %v947_v57 }
 0x415   :  { %v1848_v46 = vpop.eup %1847  ;;  %1859 = vrsqrt.f32 %v998_v26  ;;  %v997_v8 = vadd.f32 1e-05, %v981_v2  ;;  %v956_v20 = vpop.xlane.xlu1 %955 }
 0x416   :  { %v1024_v29 = vmul.f32 %v1848_v46, %v2461_v52  ;;  %v984_v51 = vmul.f32 0.03125, %v956_v20 }
 0x417   :  { %v1850_v43 = vpop.eup %1849  ;;  %1861 = vrsqrt.f32 %v997_v8  ;;  %v953_v40 = vpop.xlane.xlu0 %952 }
 0x418   :  { %v1046_v33 = vmul.f32 %v2571_v50, %v1024_v29  ;;  %v1000_v41 = vadd.f32 1e-05, %v984_v51  ;;  %v983_v61 = vmul.f32 0.03125, %v953_v40  ;;  %v1023_v11 = vmul.f32 %v1850_v43, %v2464_v56 }
 0x419   :  { %v962_v45 = vpop.xlane.xlu1 %961 }
 0x41a   :  { %v1852_v47 = vpop.eup %1851  ;;  %1863 = vrsqrt.f32 %v1000_v41  ;;  %v999_v48 = vadd.f32 1e-05, %v983_v61  ;;  %v986_v52 = vmul.f32 0.03125, %v962_v45  ;;  %v1045_v1 = vmul.f32 %v2571_v50, %v1023_v11 }
 0x41b   :  { %v959_v49 = vpop.xlane.xlu0 %958  ;;  %v2583_v0 = vadd.f32 %v2578_v62, %v1046_v33  ;;  %v1026_v44 = vmul.f32 %v1852_v47, %v2472_v13 }
 0x41c   :  { %v1854_v4 = vpop.eup %1853  ;;  %1865 = vrsqrt.f32 %v999_v48  ;;  %v1002_v58 = vadd.f32 1e-05, %v986_v52  ;;  %v985_v6 = vmul.f32 0.03125, %v959_v49  ;;  %v2587_v7 = vadd.f32 %v2578_v62, %v1045_v1 }
 0x41d   :  { %v968_v56 = vpop.xlane.xlu1 %967  ;;  %v1550_v9 = vmul.f32 -1.442695, %v2583_v0  ;;  %v1025_v14 = vmul.f32 %v1854_v4, %v2476_v55  ;;  %v1048_v59 = vmul.f32 %v2571_v50, %v1026_v44 }
 0x41e   :  { %v1856_v16 = vpop.eup %1855  ;;  %1867 = vrsqrt.f32 %v1002_v58  ;;  %v1001_v15 = vadd.f32 1e-05, %v985_v6  ;;  %v988_v19 = vmul.f32 0.03125, %v968_v56  ;;  %v1549_v13 = vmul.f32 -1.442695, %v2587_v7 }
 0x41f   :  { %v965_v60 = vpop.xlane.xlu0 %964  ;;  %1869 = vpow2.f32 %v1550_v9  ;;  %v1047_v22 = vmul.f32 %v2571_v50, %v1025_v14  ;;  %v2595_v23 = vadd.f32 %v2578_v62, %v1048_v59  ;;  %v1028_v24 = vmul.f32 %v1856_v16, %v2481_v30 }
 0x420   :  { %v1858_v25 = vpop.eup %1857  ;;  %1871 = vrsqrt.f32 %v1001_v15  ;;  %v1004_v55 = vadd.f32 1e-05, %v988_v19  ;;  %v987_v63 = vmul.f32 0.03125, %v965_v60 }
 0x421   :  { %v974_v3 = vpop.xlane.xlu1 %973  ;;  %1873 = vpow2.f32 %v1549_v13  ;;  %v2599_v27 = vadd.f32 %v2578_v62, %v1047_v22  ;;  %v1552_v28 = vmul.f32 -1.442695, %v2595_v23  ;;  %v1027_v32 = vmul.f32 %v1858_v25, %v2487_v54 }
 0x422   :  { %v1860_v10 = vpop.eup %1859  ;;  %1875 = vrsqrt.f32 %v1004_v55  ;;  %v1003_v34 = vadd.f32 1e-05, %v987_v63  ;;  %v990_v38 = vmul.f32 0.03125, %v974_v3  ;;  %v1050_v37 = vmul.f32 %v2571_v50, %v1028_v24 }
 0x423   :  { %v971_v30 = vpop.xlane.xlu0 %970  ;;  %v1551_v39 = vmul.f32 -1.442695, %v2599_v27  ;;  %1877 = vpow2.f32 %v1552_v28  ;;  %v1049_v57 = vmul.f32 %v2571_v50, %v1027_v32  ;;  %v1030_v26 = vmul.f32 %v1860_v10, %v2493_v17 }
 0x424   :  { %v1862_v2 = vpop.eup %1861  ;;  %1879 = vrsqrt.f32 %v1003_v34  ;;  %v1006_v46 = vadd.f32 1e-05, %v990_v38  ;;  %v989_v8 = vmul.f32 0.03125, %v971_v30  ;;  %v2608_v54 = vadd.f32 %v2578_v62, %v1050_v37 }
 0x425   :  { %1881 = vpow2.f32 %v1551_v39  ;;  %v2611_v20 = vadd.f32 %v2578_v62, %v1049_v57  ;;  %v1029_v29 = vmul.f32 %v1862_v2, %v2499_v18  ;;  %v1052_v51 = vmul.f32 %v2571_v50, %v1030_v26 }
 0x426   :  { %1883 = vrsqrt.f32 %v1006_v46  ;;  %v1005_v43 = vadd.f32 1e-05, %v989_v8  ;;  %v1554_v40 = vmul.f32 -1.442695, %v2608_v54 }
 0x427   :  { %v1864_v17 = vpop.eup %1863  ;;  %v1553_v33 = vmul.f32 -1.442695, %v2611_v20  ;;  %v1051_v41 = vmul.f32 %v2571_v50, %v1029_v29  ;;  %v2619_v61 = vadd.f32 %v2578_v62, %v1052_v51 }
 0x428   :  { %1885 = vrsqrt.f32 %v1005_v43  ;;  %v1032_v11 = vmul.f32 %v1864_v17, %v2508_v12 }
 0x429   :  { %v1866_v45 = vpop.eup %1865  ;;  %1887 = vpow2.f32 %v1553_v33  ;;  %v2623_v18 = vadd.f32 %v2578_v62, %v1051_v41  ;;  %v1556_v47 = vmul.f32 -1.442695, %v2619_v61 }
 0x42a   :  { %1889 = vpow2.f32 %v1554_v40  ;;  %v1031_v48 = vmul.f32 %v1866_v45, %v2512_v35  ;;  %v1054_v52 = vmul.f32 %v2571_v50, %v1032_v11 }
 0x42b   :  { %v1868_v1 = vpop.eup %1867  ;;  %v1555_v49 = vmul.f32 -1.442695, %v2623_v18  ;;  %1891 = vpow2.f32 %v1556_v47 }
 0x42c   :  { %v1870_v44 = vpop.eup %1869  ;;  %v1053_v4 = vmul.f32 %v2571_v50, %v1031_v48  ;;  %v2631_v12 = vadd.f32 %v2578_v62, %v1054_v52  ;;  %v1034_v58 = vmul.f32 %v1868_v1, %v2517_v42 }
 0x42d   :  { %v1872_v6 = vpop.eup %1871  ;;  %v1132_v56 = vadd.f32 1.0, %v1870_v44  ;;  %1893 = vpow2.f32 %v1555_v49 }
 0x42e   :  { %v1874_v9 = vpop.eup %1873  ;;  %v2635_v35 = vadd.f32 %v2578_v62, %v1053_v4  ;;  %v1558_v14 = vmul.f32 -1.442695, %v2631_v12  ;;  %v1033_v59 = vmul.f32 %v1872_v6, %v2523_v5  ;;  %v1056_v16 = vmul.f32 %v2571_v50, %v1034_v58 }
 0x42f   :  { %v1876_v15 = vpop.eup %1875  ;;  %v1131_v19 = vadd.f32 1.0, %v1874_v9  ;;  %1895 = vrcp.f32 %v1132_v56 }
 0x430   :  { %v1878_v13 = vpop.eup %1877  ;;  %v1557_v60 = vmul.f32 -1.442695, %v2635_v35  ;;  %1897 = vpow2.f32 %v1558_v14  ;;  %v1055_v42 = vmul.f32 %v2571_v50, %v1033_v59  ;;  %v2643_v22 = vadd.f32 %v2578_v62, %v1056_v16 }
 0x431   :  { %v1880_v24 = vpop.eup %1879  ;;  %1899 = vrcp.f32 %v1131_v19  ;;  %v1134_v25 = vadd.f32 1.0, %v1878_v13  ;;  %v1036_v55 = vmul.f32 %v1876_v15, %v2529_v31 }
 0x432   :  { %v1882_v5 = vpop.eup %1881  ;;  %1901 = vpow2.f32 %v1557_v60  ;;  %v2647_v63 = vadd.f32 %v2578_v62, %v1055_v42  ;;  %v1560_v3 = vmul.f32 -1.442695, %v2643_v22  ;;  %v1035_v28 = vmul.f32 %v1880_v24, %v2535_v21 }
 0x433   :  { %v1884_v32 = vpop.eup %1883  ;;  %v1133_v10 = vadd.f32 1.0, %v1882_v5  ;;  %1903 = vrcp.f32 %v1134_v25  ;;  %v1058_v34 = vmul.f32 %v2571_v50, %v1036_v55 }
 0x434   :  { %v1559_v38 = vmul.f32 -1.442695, %v2647_v63  ;;  %1905 = vpow2.f32 %v1560_v3  ;;  %v1057_v37 = vmul.f32 %v2571_v50, %v1035_v28  ;;  %v1038_v31 = vmul.f32 %v1884_v32, %v2541_v53 }
 0x435   :  { %v1886_v30 = vpop.eup %1885  ;;  %1907 = vrcp.f32 %v1133_v10  ;;  %v2656_v39 = vadd.f32 %v2578_v62, %v1058_v34 }
 0x436   :  { %v1888_v57 = vpop.eup %1887  ;;  %1909 = vpow2.f32 %v1559_v38  ;;  %v2659_v21 = vadd.f32 %v2578_v62, %v1057_v37  ;;  %v1037_v26 = vmul.f32 %v1886_v30, %v2547_v36  ;;  %v1060_v2 = vmul.f32 %v2571_v50, %v1038_v31 }
 0x437   :  { %v1890_v46 = vpop.eup %1889  ;;  %v1135_v8 = vadd.f32 1.0, %v1888_v57  ;;  %v1562_v41 = vmul.f32 -1.442695, %v2656_v39 }
 0x438   :  { %v1892_v29 = vpop.eup %1891  ;;  %v1136_v51 = vadd.f32 1.0, %v1890_v46  ;;  %v1561_v53 = vmul.f32 -1.442695, %v2659_v21  ;;  %v1059_v43 = vmul.f32 %v2571_v50, %v1037_v26  ;;  %v2666_v17 = vadd.f32 %v2578_v62, %v1060_v2 }
 0x439   :  { %1911 = vrcp.f32 %v1135_v8  ;;  %v1138_v40 = vadd.f32 1.0, %v1892_v29 }
 0x43a   :  { %v1894_v33 = vpop.eup %1893  ;;  %1913 = vrcp.f32 %v1136_v51  ;;  %v2670_v36 = vadd.f32 %v2578_v62, %v1059_v43  ;;  %v1564_v50 = vmul.f32 -1.442695, %v2666_v17 }
 0x43b   :  { %v1137_v11 = vadd.f32 1.0, %v1894_v33  ;;  %1915 = vrcp.f32 %v1138_v40 }
 0x43c   :  { %v1896_v45 = vpop.eup %1895  ;;  %1917 = vpow2.f32 %v1561_v53  ;;  %v1563_v47 = vmul.f32 -1.442695, %v2670_v36 }
 0x43d   :  { %v1898_v48 = vpop.eup %1897  ;;  %1919 = vrcp.f32 %v1137_v11  ;;  %v1180_v62 = vmul.f32 %v1896_v45, %v2583_v0 }
 0x43e   :  { %v1900_v52 = vpop.eup %1899  ;;  %v1140_v1 = vadd.f32 1.0, %v1898_v48  ;;  %1921 = vpow2.f32 %v1562_v41 }
 0x43f   :  { %v1902_v49 = vpop.eup %1901  ;;  %v1179_v44 = vmul.f32 %v1900_v52, %v2587_v7  ;;  %1923 = vpow2.f32 %v1563_v47 }
 0x440   :  { %v1904_v4 = vpop.eup %1903  ;;  %v1139_v58 = vadd.f32 1.0, %v1902_v49  ;;  %1925 = vrcp.f32 %v1140_v1 }
 0x441   :  { %v1906_v6 = vpop.eup %1905  ;;  %1708 = vmatprep.mubr.msk.f32.mxu0 %vm259_vm1, %v1179_v44  ;;  %1927 = vpow2.f32 %v1564_v50  ;;  %v1182_v7 = vmul.f32 %v1904_v4, %v2595_v23 }
 0x442   :  { %v1908_v56 = vpop.eup %1907  ;;  %1709 = vmatmul.mubr.msk.f32.vlgmr.msra.gmra.mxu0 %vm259_vm1, %v1180_v62  ;;  %1929 = vrcp.f32 %v1139_v58  ;;  %v1142_v9 = vadd.f32 1.0, %v1906_v6 }
 0x443   :  { %v1910_v14 = vpop.eup %1909  ;;  %v1181_v59 = vmul.f32 %v1908_v56, %v2599_v27 }
 0x444   :  { %v1141_v16 = vadd.f32 1.0, %v1910_v14  ;;  %1931 = vrcp.f32 %v1142_v9 }
 0x445   :  { %1711 = vmatprep.mubr.msk.f32.mxu0 %vm259_vm1, %v1181_v59 }
 0x446   :  { %v1912_v0 = vpop.eup %1911  ;;  %1712 = vmatmul.mubr.msk.f32.gmra.mxu0 %vm259_vm1, %v1182_v7  ;;  %1933 = vrcp.f32 %v1141_v16 }
 0x447   :  { %v1914_v15 = vpop.eup %1913  ;;  %v1183_v19 = vmul.f32 %v1912_v0, %v2611_v20 }
 0x448   :  { %v1916_v13 = vpop.eup %1915  ;;  %v1184_v60 = vmul.f32 %v1914_v15, %v2608_v54 }
 0x449   :  { %v1918_v42 = vpop.eup %1917  ;;  %1714 = vmatprep.mubr.msk.f32.mxu0 %vm259_vm1, %v1183_v19  ;;  %v1186_v5 = vmul.f32 %v1916_v13, %v2619_v61 }
 0x44a   :  { %v1920_v27 = vpop.eup %1919  ;;  %1715 = vmatmul.mubr.msk.f32.gmra.mxu0 %vm259_vm1, %v1184_v60  ;;  %v1143_v23 = vadd.f32 1.0, %v1918_v42 }
 0x44b   :  { %v1922_v24 = vpop.eup %1921  ;;  %v1185_v25 = vmul.f32 %v1920_v27, %v2623_v18 }
 0x44c   :  { %v1924_v55 = vpop.eup %1923  ;;  %1935 = vrcp.f32 %v1143_v23  ;;  %v1144_v3 = vadd.f32 1.0, %v1922_v24 }
 0x44d   :  { %v1926_v28 = vpop.eup %1925  ;;  %1717 = vmatprep.mubr.msk.f32.mxu0 %vm259_vm1, %v1185_v25  ;;  %v1145_v20 = vadd.f32 1.0, %v1924_v55 }
 0x44e   :  { %v1928_v54 = vpop.eup %1927  ;;  %1718 = vmatmul.mubr.msk.f32.gmra.mxu0 %vm259_vm1, %v1186_v5  ;;  %1937 = vrcp.f32 %v1144_v3  ;;  %v1188_v18 = vmul.f32 %v1926_v28, %v2631_v12 }
 0x44f   :  { %v1930_v32 = vpop.eup %1929  ;;  %1939 = vrcp.f32 %v1145_v20  ;;  %v1146_v10 = vadd.f32 1.0, %v1928_v54 }
 0x450   :  { %v1187_v34 = vmul.f32 %v1930_v32, %v2635_v35 }
 0x451   :  { %1941 = vrcp.f32 %v1146_v10  ;;  %v1932_v38 = vpop.eup %1931 }
 0x452   :  { %1720 = vmatprep.mubr.msk.f32.mxu0 %vm259_vm1, %v1187_v34  ;;  %v1190_v31 = vmul.f32 %v1932_v38, %v2643_v22 }
 0x453   :  { %v1934_v61 = vpop.eup %1933  ;;  %1721 = vmatmul.mubr.msk.f32.gmra.mxu0 %vm259_vm1, %v1188_v18 }
 0x454   :  { %v1189_v37 = vmul.f32 %v1934_v61, %v2647_v63  ;;  %v1565_v63 = vld [vmem:[%s2767_s10] ss:$0 sm:$0xff]  ;;  %s1945_s10 = smov 16  }
 0x456   :  { %1723 = vmatprep.mubr.msk.f32.mxu0 %vm259_vm1, %v1189_v37 }
 0x457   :  { %1724 = vmatmul.mubr.msk.f32.gmra.mxu0 %vm259_vm1, %v1190_v31 }
 0x459   :  { %v1936_v30 = vpop.eup %1935 }
 0x45a   :  { %v1191_v35 = vmul.f32 %v1936_v30, %v2659_v21 }
 0x45b   :  { %v1938_v57 = vpop.eup %1937 }
 0x45c   :  { %v1940_v12 = vpop.eup %1939  ;;  %1726 = vmatprep.mubr.msk.f32.mxu0 %vm259_vm1, %v1191_v35  ;;  %v1192_v26 = vmul.f32 %v1938_v57, %v2656_v39 }
 0x45d   :  { %v1193_v2 = vmul.f32 %v1940_v12, %v2670_v36 }
 0x45e   :  { %v1942_v46 = vpop.eup %1941  ;;  %1727 = vmatmul.mubr.msk.f32.gmra.mxu0 %vm259_vm1, %v1192_v26 }
 0x45f   :  { %1729 = vmatprep.mubr.msk.f32.mxu0 %vm259_vm1, %v1193_v2  ;;  %v1194_v22 = vmul.f32 %v1942_v46, %v2666_v17 }
 0x462   :  { %1730 = vmatmul.mubr.msk.f32.gmra.mxu0 %vm259_vm1, %v1194_v22  ;;  %vm1489_vm1 = vcmask 1048512  }
 0x502   :  { %v1710_v21 = vpop.f32.mrf.mxu0 }
 0x503   :  { %v1326_v8 = vadd.f32 %v1710_v21, %v1565_v63 }
 0x504   :  { %v1320_v29 = vpop.f32.mrf.mxu0 }
 0x505   :  { %v1321_v39 = vadd.f32 %v1565_v63, %v1320_v29  ;;  %1402 = vrot.lane.b32.xlu0 %v1326_v8, %s1943_s14 }
 0x506   :  { %v1713_v51 = vpop.f32.mrf.mxu0 }
 0x507   :  { %1400 = vst.msk [vmem:[%s2768_s11] sm:$0xff] %vm1399_vm2, %v1321_v39  ;;  %v1336_v53 = vadd.f32 %v1713_v51, %v1565_v63 }
 0x508   :  { %v1330_v43 = vpop.f32.mrf.mxu0 }
 0x509   :  { %1414 = vrot.lane.b32.xlu1 %v1336_v53, %s1944_s15  ;;  %v1331_v17 = vadd.f32 %v1565_v63, %v1330_v43 }
 0x50a   :  { %v1716_v40 = vpop.f32.mrf.mxu0 }
 0x50b   :  { %v1346_v33 = vadd.f32 %v1716_v40, %v1565_v63 }
 0x50c   :  { %v1340_v41 = vpop.f32.mrf.mxu0 }
 0x50d   :  { %1408 = vrot.lane.b32.xlu1 %v1331_v17, %s1945_s10  ;;  %1426 = vrot.lane.b32.xlu0 %v1346_v33, %s1946_s16  ;;  %v1341_v11 = vadd.f32 %v1565_v63, %v1340_v41 }
 0x50e   :  { %v1719_v36 = vpop.f32.mrf.mxu0 }
 0x50f   :  { %v1356_v45 = vadd.f32 %v1719_v36, %v1565_v63 }
 0x510   :  { %v1350_v47 = vpop.f32.mrf.mxu0 }
 0x511   :  { %1420 = vrot.lane.b32.xlu1 %v1341_v11, %s1947_s17  ;;  %1438 = vrot.lane.b32.xlu0 %v1356_v45, %s1948_s18  ;;  %v1351_v48 = vadd.f32 %v1565_v63, %v1350_v47 }
 0x513   :  { %v1722_v50 = vpop.f32.mrf.mxu0 }
 0x514   :  { %v1366_v52 = vadd.f32 %v1722_v50, %v1565_v63 }
 0x515   :  { %v1360_v1 = vpop.f32.mrf.mxu0  ;;  %1432 = vrot.lane.b32.xlu1 %v1351_v48, %s1949_s19 }
 0x516   :  { %1450 = vrot.lane.b32.xlu0 %v1366_v52, %s1950_s20  ;;  %v1361_v49 = vadd.f32 %v1565_v63, %v1360_v1 }
 0x517   :  { %v1725_v44 = vpop.f32.mrf.mxu0 }
 0x518   :  { %v1376_v4 = vadd.f32 %v1725_v44, %v1565_v63 }
 0x519   :  { %v1370_v62 = vpop.f32.mrf.mxu0  ;;  %1444 = vrot.lane.b32.xlu1 %v1361_v49, %s1951_s5 }
 0x51a   :  { %1462 = vrot.lane.b32.xlu0 %v1376_v4, %s1952_s21  ;;  %v1371_v58 = vadd.f32 %v1565_v63, %v1370_v62 }
 0x51d   :  { %1456 = vrot.lane.b32.xlu1 %v1371_v58, %s1953_s22 }
 0x51e   :  { %v1728_v6 = vpop.f32.mrf.mxu0 }
 0x51f   :  { %v1386_v56 = vadd.f32 %v1728_v6, %v1565_v63 }
 0x520   :  { %v1380_v9 = vpop.f32.mrf.mxu0 }
 0x521   :  { %v1381_v14 = vadd.f32 %v1565_v63, %v1380_v9  ;;  %1474 = vrot.lane.b32.xlu0 %v1386_v56, %s1954_s23 }
 0x522   :  { %v1731_v59 = vpop.f32.mrf.mxu0 }
 0x523   :  { %v1396_v7 = vadd.f32 %v1731_v59, %v1565_v63  ;;  %1468 = vrot.lane.b32.xlu1 %v1381_v14, %s1955_s3 }
 0x524   :  { %v1390_v16 = vpop.f32.mrf.mxu0 }
 0x525   :  { %v1391_v0 = vadd.f32 %v1565_v63, %v1390_v16  ;;  %1486 = vrot.lane.b32.xlu0 %v1396_v7, %s1956_s4 }
 0x527   :  { %1480 = vrot.lane.b32.xlu1 %v1391_v0, %s1957_s6 }
 0x577   :  { %v1403_v15 = vpop.permute.xlu0 %1402 }
 0x578   :  { %1406 = vst.msk [vmem:[%s2768_s11] sm:$0xff] %vm1405_vm3, %v1403_v15 }
 0x57b   :  { %v1415_v19 = vpop.permute.xlu1 %1414 }
 0x57f   :  { %v1409_v13 = vpop.permute.xlu1 %1408  ;;  %v1427_v60 = vpop.permute.xlu0 %1426 }
 0x580   :  { %1412 = vst.msk [vmem:[%s2768_s11] sm:$0xff] %vm1411_vm4, %v1409_v13 }
 0x581   :  { %1418 = vst.msk [vmem:[%s2768_s11] sm:$0xff] %vm1417_vm5, %v1415_v19 }
 0x583   :  { %v1421_v42 = vpop.permute.xlu1 %1420  ;;  %v1439_v27 = vpop.permute.xlu0 %1438 }
 0x584   :  { %1424 = vst.msk [vmem:[%s2768_s11] sm:$0xff] %vm1423_vm6, %v1421_v42 }
 0x585   :  { %1430 = vst.msk [vmem:[%s2768_s11] sm:$0xff] %vm1429_vm7, %v1427_v60 }
 0x587   :  { %v1433_v23 = vpop.permute.xlu1 %1432 }
 0x588   :  { %1436 = vst.msk [vmem:[%s2768_s11] sm:$0xff] %vm1435_vm8, %v1433_v23  ;;  %v1451_v24 = vpop.permute.xlu0 %1450 }
 0x589   :  { %1442 = vst.msk [vmem:[%s2768_s11] sm:$0xff] %vm1441_vm9, %v1439_v27 }
 0x58b   :  { %v1445_v25 = vpop.permute.xlu1 %1444 }
 0x58c   :  { %1448 = vst.msk [vmem:[%s2768_s11] sm:$0xff] %vm1447_vm10, %v1445_v25  ;;  %v1463_v55 = vpop.permute.xlu0 %1462 }
 0x58d   :  { %1454 = vst.msk [vmem:[%s2768_s11] sm:$0xff] %vm1453_vm11, %v1451_v24 }
 0x58f   :  { %v1457_v5 = vpop.permute.xlu1 %1456 }
 0x590   :  { %1460 = vst.msk [vmem:[%s2768_s11] sm:$0xff] %vm1459_vm12, %v1457_v5 }
 0x591   :  { %1466 = vst.msk [vmem:[%s2768_s11] sm:$0xff] %vm1465_vm13, %v1463_v55 }
 0x593   :  { %v1475_v3 = vpop.permute.xlu0 %1474 }
 0x595   :  { %v1469_v28 = vpop.permute.xlu1 %1468 }
 0x596   :  { %1472 = vst.msk [vmem:[%s2768_s11] sm:$0xff] %vm1471_vm14, %v1469_v28 }
 0x597   :  { %1478 = vst.msk [vmem:[%s2768_s11] sm:$0xff] %vm1477_vm15, %v1475_v3  ;;  %v1487_v54 = vpop.permute.xlu0 %1486 }
 0x599   :  { %v1481_v20 = vpop.permute.xlu1 %1480 }
 0x59a   :  { %1484 = vst.msk [vmem:[%s2768_s11] sm:$0xff] %vm1483_vm0, %v1481_v20 }
 0x59b   :  { %1490 = vst.msk [vmem:[%s2768_s11] sm:$0xff] %vm1489_vm1, %v1487_v54 }

</bundles_post_ra>
